<compile_context>
chip_gen: v7x
topology: tpu7x:2x2x1
jax: 0.10.0
libtpu: 0.0.40
codegen_flags: <defaults>
</compile_context>

<pallas_src>
import functools

import jax
import jax.numpy as jnp
from jax import lax
from jax.experimental import pallas as pl
from jax.experimental.pallas import tpu as pltpu


def _rup(x, m):
    return ((x + m - 1) // m) * m


def _pick_h_tile(h, w_out, wp2, ci_p, ce_p, co_p, budget_bytes=8 << 20):
    """Largest H-tile (divisor of h) whose per-step VMEM footprint fits the budget,
    preferring >=2 tiles per image for pipeline depth / megacore work split."""
    def fits(th):
        need = ((th + 2) * wp2 * (ci_p + ce_p)      # input slab + expanded scratch
                + 2 * th * w_out * co_p) * 4        # double-buffered output block
        return need <= budget_bytes

    divisors = [d for d in range(1, h + 1) if h % d == 0]
    preferred = [d for d in divisors if d <= max(1, h // 2) and fits(d)]
    if preferred:
        return max(preferred)
    fitting = [d for d in divisors if fits(d)]
    return max(fitting) if fitting else 1


# ----------------------------------------------------------------------------
# Fused kernel: expand (1x1) + BN1 + ReLU6 -> depthwise 3x3 + BN2 + ReLU6
#               -> project (1x1) + BN3 (+ residual)
# ----------------------------------------------------------------------------
def _bottleneck_kernel(x_hbm, w1_ref, s1_ref, b1_ref, w2_ref, s2_ref, b2_ref,
                       w3_ref, s3_ref, b3_ref, o_ref, slab, e_scr, dma_sem,
                       *, h_padded, true_w, add_residual):
    n = pl.program_id(0)
    i = pl.program_id(1)
    th, w_out, co = o_ref.shape[1], o_ref.shape[2], o_ref.shape[3]
    hp2, wp2, ci = slab.shape
    ce = e_scr.shape[2]

    # --- fetch the (TH+2)-row halo slab of the (pre-padded) input for this tile ---
    row0 = n * h_padded + i * th
    cp = pltpu.make_async_copy(x_hbm.at[pl.ds(row0, hp2)], slab, dma_sem)
    cp.start()
    cp.wait()

    # --- 1x1 expand + BN1 + ReLU6 on the MXU; expanded tile never leaves VMEM ---
    xs = slab[...].reshape(hp2 * wp2, ci)            # wp2 % 8 == 0 -> layout no-op
    e = jnp.dot(xs, w1_ref[...], preferred_element_type=jnp.float32)
    e = jnp.clip(e * s1_ref[...] + b1_ref[...], 0.0, 6.0)
    e = e.reshape(hp2, wp2, ce)

    # Zero the columns that correspond to conv2's zero padding: expand+BN of a
    # zero-padded pixel is NOT zero, so it must be masked before the depthwise.
    col = lax.broadcasted_iota(jnp.int32, (wp2, ce), 0)
    keep = (col >= 1) & (col <= true_w)
    e_scr[...] = jnp.where(keep, e, 0.0)

    # Zero the top / bottom padding row only when this tile touches the border.
    @pl.when(i == 0)
    def _():
        e_scr[0] = jnp.zeros((wp2, ce), jnp.float32)

    @pl.when(i == pl.num_programs(1) - 1)
    def _():
        e_scr[hp2 - 1] = jnp.zeros((wp2, ce), jnp.float32)

    # --- depthwise 3x3 (stride 1, pad 1) + BN2 + ReLU6: 9 static taps on the VPU ---
    w2 = w2_ref[...]                                  # (3, 3, Ce)
    acc = jnp.zeros((th, w_out, ce), jnp.float32)
    for ki in range(3):
        for kj in range(3):
            acc = acc + e_scr[ki:ki + th, kj:kj + w_out, :] * w2[ki, kj]
    y = jnp.clip(acc * s2_ref[...] + b2_ref[...], 0.0, 6.0)

    # --- 1x1 project + BN3 (+ residual straight from the resident input slab) ---
    out = jnp.dot(y.reshape(th * w_out, ce), w3_ref[...],
                  preferred_element_type=jnp.float32)
    out = out * s3_ref[...] + b3_ref[...]
    if add_residual:
        # inplanes == outplanes here, so ci == co (both channel-padded identically).
        out = out + slab[1:1 + th, 1:1 + w_out, :].reshape(th * w_out, ci)
    o_ref[0] = out.reshape(th, w_out, co)


# ----------------------------------------------------------------------------
# Wrapper: NCHW in / NCHW out (PyTorch interface parity).
# TODO(synk): for a chain of blocks, keep NHWC + padded channels end-to-end and
# drop the per-block transposes / channel pad / slice.
# ----------------------------------------------------------------------------
def linear_bottleneck_forward(x_nchw, params, *, inplanes, outplanes, stride=1,
                              dilation=1, t=6, h_tile=None):
    # TODO(synk): stride>1 / dilation>1 depthwise and the t==1 (no expand) path
    # are not implemented in the fused kernel.
    assert stride == 1 and dilation == 1 and t != 1
    N, C, H, W = x_nchw.shape
    assert C == inplanes
    add_residual = (stride == 1) and (inplanes == outplanes) and (t != 1)

    ci_p, ce_p = params["w1_mat_p"].shape
    co_p = params["w3_mat_p"].shape[1]

    # Lane/sublane-friendly padded widths.
    w_out = _rup(W, 8)              # output tile width (sublane aligned)
    wp2 = _rup(w_out + 2, 8)        # padded input width (halo + alignment)

    # NCHW -> NHWC and ONE cheap pad pass over the *small* input tensor:
    # +1 spatial halo, zero-fill width to wp2, channels zero-padded to ci_p.
    x_nhwc = jnp.transpose(x_nchw, (0, 2, 3, 1))
    xp = jnp.pad(x_nhwc, ((0, 0), (1, 1), (1, wp2 - 1 - W), (0, ci_p - inplanes)))
    x_flat = xp.reshape(N * (H + 2), wp2, ci_p)

    th = h_tile if h_tile is not None else _pick_h_tile(H, w_out, wp2, ci_p, ce_p, co_p)
    assert H % th == 0
    n_h = H // th

    kernel = functools.partial(_bottleneck_kernel, h_padded=H + 2, true_w=W,
                               add_residual=add_residual)

    out = pl.pallas_call(
        kernel,
        out_shape=jax.ShapeDtypeStruct((N, H, w_out, co_p), jnp.float32),
        grid_spec=pltpu.PrefetchScalarGridSpec(
            num_scalar_prefetch=0,
            grid=(N, n_h),
            in_specs=[
                pl.BlockSpec(memory_space=pl.ANY),                    # x stays in HBM
                pl.BlockSpec((ci_p, ce_p), lambda n, i: (0, 0)),      # w1 (resident)
                pl.BlockSpec((1, ce_p), lambda n, i: (0, 0)),         # bn1 scale
                pl.BlockSpec((1, ce_p), lambda n, i: (0, 0)),         # bn1 bias
                pl.BlockSpec((3, 3, ce_p), lambda n, i: (0, 0, 0)),   # depthwise weights
                pl.BlockSpec((1, ce_p), lambda n, i: (0, 0)),         # bn2 scale
                pl.BlockSpec((1, ce_p), lambda n, i: (0, 0)),         # bn2 bias
                pl.BlockSpec((ce_p, co_p), lambda n, i: (0, 0)),      # w3 (resident)
                pl.BlockSpec((1, co_p), lambda n, i: (0, 0)),         # bn3 scale
                pl.BlockSpec((1, co_p), lambda n, i: (0, 0)),         # bn3 bias
            ],
            out_specs=pl.BlockSpec((1, th, w_out, co_p), lambda n, i: (n, i, 0, 0)),
            scratch_shapes=[
                pltpu.VMEM((th + 2, wp2, ci_p), jnp.float32),   # input slab (row halo)
                pltpu.VMEM((th + 2, wp2, ce_p), jnp.float32),   # expanded activation tile
                pltpu.SemaphoreType.DMA,
            ],
        ),
        compiler_params=pltpu.CompilerParams(
            dimension_semantics=("parallel", "parallel"),
            vmem_limit_bytes=32 * 1024 * 1024,
        ),
    )(x_flat, params["w1_mat_p"], params["bn1_scale_p"], params["bn1_bias_p"],
      params["w2_dw_p"], params["bn2_scale_p"], params["bn2_bias_p"],
      params["w3_mat_p"], params["bn3_scale_p"], params["bn3_bias_p"])

    out = out[:, :, :W, :outplanes]                 # drop lane / width padding
    return jnp.transpose(out, (0, 3, 1, 2))         # NHWC -> NCHW


# ----------------------------------------------------------------------------
# Pure-JAX reference (lax convs, NCHW) — residual gated exactly like the module.
# ----------------------------------------------------------------------------
def reference_forward(x, p, *, inplanes, outplanes, stride=1, t=6):
    dn = ("NCHW", "OIHW", "NCHW")

    def bn(y, scale, bias):
        return y * scale.reshape(1, -1, 1, 1) + bias.reshape(1, -1, 1, 1)

    out = x
    if t != 1:
        out = lax.conv_general_dilated(out, p["w1_oihw"], (1, 1), "VALID",
                                       dimension_numbers=dn)
        out = jnp.clip(bn(out, p["bn1_scale"][0], p["bn1_bias"][0]), 0.0, 6.0)
    cexp = p["w2_oihw"].shape[0]
    out = lax.conv_general_dilated(out, p["w2_oihw"], (stride, stride),
                                   ((1, 1), (1, 1)), dimension_numbers=dn,
                                   feature_group_count=cexp)
    out = jnp.clip(bn(out, p["bn2_scale"][0], p["bn2_bias"][0]), 0.0, 6.0)
    out = lax.conv_general_dilated(out, p["w3_oihw"], (1, 1), "VALID",
                                   dimension_numbers=dn)
    out = bn(out, p["bn3_scale"][0], p["bn3_bias"][0])
    if stride == 1 and inplanes == outplanes and t != 1:
        out = out + x
    return out


# ----------------------------------------------------------------------------
def make_params(key, inplanes, outplanes, t):
    innerplanes = int(inplanes * abs(t))
    ci_p, ce_p, co_p = _rup(inplanes, 128), _rup(innerplanes, 128), _rup(outplanes, 128)
    ks = jax.random.split(key, 12)

    # PyTorch-layout conv weights (OIHW), no bias.
    w1_oihw = 0.1 * jax.random.normal(ks[0], (innerplanes, inplanes, 1, 1), jnp.float32)
    w2_oihw = 0.1 * jax.random.normal(ks[1], (innerplanes, 1, 3, 3), jnp.float32)
    w3_oihw = 0.1 * jax.random.normal(ks[2], (outplanes, innerplanes, 1, 1), jnp.float32)

    def bn_fold(kg, kb, km, kv, c):
        gamma = 1.0 + 0.1 * jax.random.normal(kg, (c,), jnp.float32)
        beta = 0.1 * jax.random.normal(kb, (c,), jnp.float32)
        mean = 0.1 * jax.random.normal(km, (c,), jnp.float32)
        var = jnp.abs(jax.random.normal(kv, (c,), jnp.float32)) + 0.5
        scale = gamma / jnp.sqrt(var + 1e-5)
        bias = beta - mean * scale
        return scale.reshape(1, c), bias.reshape(1, c)

    bn1_scale, bn1_bias = bn_fold(ks[3], ks[4], ks[5], ks[6], innerplanes)
    bn2_scale, bn2_bias = bn_fold(ks[7], ks[8], ks[9], ks[10], innerplanes)
    k2 = jax.random.split(ks[11], 4)
    bn3_scale, bn3_bias = bn_fold(k2[0], k2[1], k2[2], k2[3], outplanes)

    # Kernel layout, zero-padded to channel multiples of 128 (lane-dense).
    w1_mat = jnp.transpose(w1_oihw[:, :, 0, 0], (1, 0))       # (Cin,  Cexp)
    w2_dw = jnp.transpose(w2_oihw[:, 0, :, :], (1, 2, 0))     # (3, 3, Cexp)
    w3_mat = jnp.transpose(w3_oihw[:, :, 0, 0], (1, 0))       # (Cexp, Cout)

    def pad2(a, r, c):
        return jnp.pad(a, ((0, r - a.shape[0]), (0, c - a.shape[1])))

    return {
        # torch layout (for the lax reference)
        "w1_oihw": w1_oihw, "w2_oihw": w2_oihw, "w3_oihw": w3_oihw,
        "bn1_scale": bn1_scale, "bn1_bias": bn1_bias,
        "bn2_scale": bn2_scale, "bn2_bias": bn2_bias,
        "bn3_scale": bn3_scale, "bn3_bias": bn3_bias,
        # kernel layout (padded)
        "w1_mat_p": pad2(w1_mat, ci_p, ce_p),
        "w2_dw_p": jnp.pad(w2_dw, ((0, 0), (0, 0), (0, ce_p - innerplanes))),
        "w3_mat_p": pad2(w3_mat, ce_p, co_p),
        "bn1_scale_p": pad2(bn1_scale, 1, ce_p), "bn1_bias_p": pad2(bn1_bias, 1, ce_p),
        "bn2_scale_p": pad2(bn2_scale, 1, ce_p), "bn2_bias_p": pad2(bn2_bias, 1, ce_p),
        "bn3_scale_p": pad2(bn3_scale, 1, co_p), "bn3_bias_p": pad2(bn3_bias, 1, co_p),
    }


if __name__ == "__main__":
    inplanes, outplanes, t, stride = 4, 4, 6, 1
    N, H, W = 2, 16, 16

    key = jax.random.PRNGKey(0)
    kx, kp = jax.random.split(key)
    x = jax.random.normal(kx, (N, inplanes, H, W), jnp.float32)   # NCHW like PyTorch
    params = make_params(kp, inplanes, outplanes, t)

    out = linear_bottleneck_forward(x, params, inplanes=inplanes, outplanes=outplanes,
                                    stride=stride, t=t)
    out = jax.block_until_ready(out)

    ref = jax.block_until_ready(reference_forward(x, params, inplanes=inplanes,
                                                  outplanes=outplanes, stride=stride, t=t))
    assert out.shape == (N, outplanes, H, W)
    err = float(jnp.max(jnp.abs(out - ref)))
    assert err < 2e-4, err

    print("KERNEL_OK")
</pallas_src>

<mosaic_0001>
module attributes {stable_mosaic.version = 11 : i64} {
  func.func @_bottleneck_kernel(%arg0: i32, %arg1: i32, %arg2: memref<36x24x128xf32, #tpu.memory_space<any>>, %arg3: memref<128x128xf32, #tpu.memory_space<vmem>>, %arg4: memref<1x128xf32, #tpu.memory_space<vmem>>, %arg5: memref<1x128xf32, #tpu.memory_space<vmem>>, %arg6: memref<3x3x128xf32, #tpu.memory_space<vmem>>, %arg7: memref<1x128xf32, #tpu.memory_space<vmem>>, %arg8: memref<1x128xf32, #tpu.memory_space<vmem>>, %arg9: memref<128x128xf32, #tpu.memory_space<vmem>>, %arg10: memref<1x128xf32, #tpu.memory_space<vmem>>, %arg11: memref<1x128xf32, #tpu.memory_space<vmem>>, %arg12: memref<1x8x16x128xf32, #tpu.memory_space<vmem>>, %arg13: memref<10x24x128xf32, #tpu.memory_space<vmem>>, %arg14: memref<10x24x128xf32, #tpu.memory_space<vmem>>, %arg15: memref<!tpu.dma_semaphore, #tpu.memory_space<semaphore_mem>>) attributes {dimension_semantics = [#tpu.dimension_semantics<parallel>, #tpu.dimension_semantics<parallel>], iteration_bounds = array<i64: 2, 2>, scalar_prefetch = 0 : i64, scratch_operands = 3 : i64, tpu.core_type = #tpu.core_type<tc>, window_params = [{}, {pipeline_mode = #tpu.pipeline_mode<synchronous>, transform_indices = @transform_1, window_bounds = array<i64: 128, 128>}, {pipeline_mode = #tpu.pipeline_mode<synchronous>, transform_indices = @transform_2, window_bounds = array<i64: 1, 128>}, {pipeline_mode = #tpu.pipeline_mode<synchronous>, transform_indices = @transform_3, window_bounds = array<i64: 1, 128>}, {pipeline_mode = #tpu.pipeline_mode<synchronous>, transform_indices = @transform_4, window_bounds = array<i64: 3, 3, 128>}, {pipeline_mode = #tpu.pipeline_mode<synchronous>, transform_indices = @transform_5, window_bounds = array<i64: 1, 128>}, {pipeline_mode = #tpu.pipeline_mode<synchronous>, transform_indices = @transform_6, window_bounds = array<i64: 1, 128>}, {pipeline_mode = #tpu.pipeline_mode<synchronous>, transform_indices = @transform_7, window_bounds = array<i64: 128, 128>}, {pipeline_mode = #tpu.pipeline_mode<synchronous>, transform_indices = @transform_8, window_bounds = array<i64: 1, 128>}, {pipeline_mode = #tpu.pipeline_mode<synchronous>, transform_indices = @transform_9, window_bounds = array<i64: 1, 128>}, {transform_indices = @transform_10, window_bounds = array<i64: 1, 8, 16, 128>}]} {
    %c18_i32 = arith.constant 18 : i32
    %0 = arith.muli %arg0, %c18_i32 : i32
    %c8_i32 = arith.constant 8 : i32
    %1 = arith.muli %arg1, %c8_i32 : i32
    %2 = arith.addi %0, %1 : i32
    %c0_i32 = arith.constant 0 : i32
    %c0_i32_0 = arith.constant 0 : i32
    %3 = tpu.memref_slice %arg2[%2, %c0_i32, %c0_i32_0] : memref<36x24x128xf32, #tpu.memory_space<any>> -> memref<10x24x128xf32, #tpu.memory_space<any>>
    tpu.enqueue_dma source(%3 : memref<10x24x128xf32, #tpu.memory_space<any>>) target(%arg13 : memref<10x24x128xf32, #tpu.memory_space<vmem>>) target_semaphore(%arg15 : memref<!tpu.dma_semaphore, #tpu.memory_space<semaphore_mem>>)
    %c0_i32_1 = arith.constant 0 : i32
    %c0_i32_2 = arith.constant 0 : i32
    %4 = tpu.memref_slice %arg2[%2, %c0_i32_1, %c0_i32_2] : memref<36x24x128xf32, #tpu.memory_space<any>> -> memref<10x24x128xf32, #tpu.memory_space<any>>
    tpu.wait_dma2 semaphore(%arg15 : memref<!tpu.dma_semaphore, #tpu.memory_space<semaphore_mem>>) src(%4 : memref<10x24x128xf32, #tpu.memory_space<any>>) dst(%arg13 : memref<10x24x128xf32, #tpu.memory_space<vmem>>)
    %c0 = arith.constant 0 : index
    %c0_3 = arith.constant 0 : index
    %c0_4 = arith.constant 0 : index
    %5 = vector.load %arg13[%c0, %c0_3, %c0_4] : memref<10x24x128xf32, #tpu.memory_space<vmem>>, vector<10x24x128xf32>
    %6 = vector.shape_cast %5 : vector<10x24x128xf32> to vector<240x128xf32>
    %c0_5 = arith.constant 0 : index
    %c0_6 = arith.constant 0 : index
    %7 = vector.load %arg3[%c0_5, %c0_6] : memref<128x128xf32, #tpu.memory_space<vmem>>, vector<128x128xf32>
    %cst = arith.constant dense<0.000000e+00> : vector<240x128xf32>
    %8 = tpu.matmul %6, %7, %cst {dimension_numbers = #tpu.dot_dimension_numbers<[1], [0], [0], [1], [0, 0, 1, 1], [], []>} : vector<240x128xf32>, vector<128x128xf32>, vector<240x128xf32> -> vector<240x128xf32>
    %c0_7 = arith.constant 0 : index
    %c0_8 = arith.constant 0 : index
    %9 = vector.load %arg4[%c0_7, %c0_8] : memref<1x128xf32, #tpu.memory_space<vmem>>, vector<1x128xf32>
    %10 = vector.broadcast %9 : vector<1x128xf32> to vector<240x128xf32>
    %11 = arith.mulf %8, %10 : vector<240x128xf32>
    %c0_9 = arith.constant 0 : index
    %c0_10 = arith.constant 0 : index
    %12 = vector.load %arg5[%c0_9, %c0_10] : memref<1x128xf32, #tpu.memory_space<vmem>>, vector<1x128xf32>
    %13 = vector.broadcast %12 : vector<1x128xf32> to vector<240x128xf32>
    %14 = arith.addf %11, %13 : vector<240x128xf32>
    %cst_11 = arith.constant 0.000000e+00 : f32
    %cst_12 = arith.constant 6.000000e+00 : f32
    %15 = vector.broadcast %cst_11 : f32 to vector<240x128xf32>
    %16 = arith.maximumf %15, %14 : vector<240x128xf32>
    %17 = vector.broadcast %cst_12 : f32 to vector<240x128xf32>
    %18 = arith.minimumf %17, %16 : vector<240x128xf32>
    %19 = vector.shape_cast %18 : vector<240x128xf32> to vector<10x24x128xf32>
    %20 = tpu.iota {dimensions = array<i32: 0>} : vector<24x128xi32>
    %c1_i32 = arith.constant 1 : i32
    %21 = vector.broadcast %c1_i32 : i32 to vector<24x128xi32>
    %22 = arith.cmpi sge, %20, %21 : vector<24x128xi32>
    %c16_i32 = arith.constant 16 : i32
    %23 = vector.broadcast %c16_i32 : i32 to vector<24x128xi32>
    %24 = arith.cmpi sle, %20, %23 : vector<24x128xi32>
    %25 = arith.andi %22, %24 : vector<24x128xi1>
    %cst_13 = arith.constant 0.000000e+00 : f32
    %26 = vector.shape_cast %25 : vector<24x128xi1> to vector<1x24x128xi1>
    %27 = vector.broadcast %26 : vector<1x24x128xi1> to vector<10x24x128xi1>
    %28 = vector.broadcast %cst_13 : f32 to vector<10x24x128xf32>
    %29 = arith.select %27, %19, %28 : vector<10x24x128xi1>, vector<10x24x128xf32>
    %c0_14 = arith.constant 0 : index
    %c0_15 = arith.constant 0 : index
    %c0_16 = arith.constant 0 : index
    %30 = vector.load %arg14[%c0_14, %c0_15, %c0_16] : memref<10x24x128xf32, #tpu.memory_space<vmem>>, vector<10x24x128xf32>
    tpu.vector_store %arg14[%c0_14, %c0_15, %c0_16], %29 {strides = array<i32>} : memref<10x24x128xf32, #tpu.memory_space<vmem>>, vector<10x24x128xf32>,
    %c0_i32_17 = arith.constant 0 : i32
    %31 = arith.cmpi eq, %arg1, %c0_i32_17 : i32
    %32 = arith.extui %31 : i1 to i32
    %c0_i32_18 = arith.constant 0 : i32
    %33 = arith.cmpi ne, %32, %c0_i32_18 : i32
    scf.if %33 {
      %cst_70 = arith.constant 0.000000e+00 : f32
      %130 = vector.broadcast %cst_70 : f32 to vector<24x128xf32>
      %c0_71 = arith.constant 0 : index
      %c0_72 = arith.constant 0 : index
      %c0_73 = arith.constant 0 : index
      %131 = vector.load %arg14[%c0_71, %c0_72, %c0_73] : memref<10x24x128xf32, #tpu.memory_space<vmem>>, vector<1x24x128xf32>
      %132 = vector.shape_cast %131 : vector<1x24x128xf32> to vector<24x128xf32>
      %133 = vector.shape_cast %130 : vector<24x128xf32> to vector<1x24x128xf32>
      tpu.vector_store %arg14[%c0_71, %c0_72, %c0_73], %133 {strides = array<i32>} : memref<10x24x128xf32, #tpu.memory_space<vmem>>, vector<1x24x128xf32>,
    } else {
    }
    %c1_i32_19 = arith.constant 1 : i32
    %34 = arith.cmpi eq, %arg1, %c1_i32_19 : i32
    %35 = arith.extui %34 : i1 to i32
    %c0_i32_20 = arith.constant 0 : i32
    %36 = arith.cmpi ne, %35, %c0_i32_20 : i32
    scf.if %36 {
      %cst_70 = arith.constant 0.000000e+00 : f32
      %130 = vector.broadcast %cst_70 : f32 to vector<24x128xf32>
      %c9 = arith.constant 9 : index
      %c0_71 = arith.constant 0 : index
      %c0_72 = arith.constant 0 : index
      %131 = vector.load %arg14[%c9, %c0_71, %c0_72] : memref<10x24x128xf32, #tpu.memory_space<vmem>>, vector<1x24x128xf32>
      %132 = vector.shape_cast %131 : vector<1x24x128xf32> to vector<24x128xf32>
      %133 = vector.shape_cast %130 : vector<24x128xf32> to vector<1x24x128xf32>
      tpu.vector_store %arg14[%c9, %c0_71, %c0_72], %133 {strides = array<i32>} : memref<10x24x128xf32, #tpu.memory_space<vmem>>, vector<1x24x128xf32>,
    } else {
    }
    %c0_21 = arith.constant 0 : index
    %c0_22 = arith.constant 0 : index
    %c0_23 = arith.constant 0 : index
    %37 = vector.load %arg6[%c0_21, %c0_22, %c0_23] : memref<3x3x128xf32, #tpu.memory_space<vmem>>, vector<3x3x128xf32>
    %cst_24 = arith.constant 0.000000e+00 : f32
    %38 = vector.broadcast %cst_24 : f32 to vector<8x16x128xf32>
    %c0_25 = arith.constant 0 : index
    %c0_26 = arith.constant 0 : index
    %c0_27 = arith.constant 0 : index
    %39 = vector.load %arg14[%c0_25, %c0_26, %c0_27] : memref<10x24x128xf32, #tpu.memory_space<vmem>>, vector<8x16x128xf32>
    %40 = vector.extract_strided_slice %37 {offsets = [0, 0, 0], sizes = [1, 1, 128], strides = [1, 1, 1]} : vector<3x3x128xf32> to vector<1x1x128xf32>
    %41 = vector.shape_cast %40 : vector<1x1x128xf32> to vector<128xf32>
    %42 = vector.shape_cast %41 : vector<128xf32> to vector<1x1x128xf32>
    %43 = vector.broadcast %42 : vector<1x1x128xf32> to vector<8x16x128xf32>
    %44 = arith.mulf %39, %43 : vector<8x16x128xf32>
    %45 = arith.addf %38, %44 : vector<8x16x128xf32>
    %c0_28 = arith.constant 0 : index
    %c1 = arith.constant 1 : index
    %c0_29 = arith.constant 0 : index
    %46 = vector.load %arg14[%c0_28, %c1, %c0_29] : memref<10x24x128xf32, #tpu.memory_space<vmem>>, vector<8x16x128xf32>
    %47 = vector.extract_strided_slice %37 {offsets = [0, 1, 0], sizes = [1, 1, 128], strides = [1, 1, 1]} : vector<3x3x128xf32> to vector<1x1x128xf32>
    %48 = vector.shape_cast %47 : vector<1x1x128xf32> to vector<128xf32>
    %49 = vector.shape_cast %48 : vector<128xf32> to vector<1x1x128xf32>
    %50 = vector.broadcast %49 : vector<1x1x128xf32> to vector<8x16x128xf32>
    %51 = arith.mulf %46, %50 : vector<8x16x128xf32>
    %52 = arith.addf %45, %51 : vector<8x16x128xf32>
    %c0_30 = arith.constant 0 : index
    %c2 = arith.constant 2 : index
    %c0_31 = arith.constant 0 : index
    %53 = vector.load %arg14[%c0_30, %c2, %c0_31] : memref<10x24x128xf32, #tpu.memory_space<vmem>>, vector<8x16x128xf32>
    %54 = vector.extract_strided_slice %37 {offsets = [0, 2, 0], sizes = [1, 1, 128], strides = [1, 1, 1]} : vector<3x3x128xf32> to vector<1x1x128xf32>
    %55 = vector.shape_cast %54 : vector<1x1x128xf32> to vector<128xf32>
    %56 = vector.shape_cast %55 : vector<128xf32> to vector<1x1x128xf32>
    %57 = vector.broadcast %56 : vector<1x1x128xf32> to vector<8x16x128xf32>
    %58 = arith.mulf %53, %57 : vector<8x16x128xf32>
    %59 = arith.addf %52, %58 : vector<8x16x128xf32>
    %c1_32 = arith.constant 1 : index
    %c0_33 = arith.constant 0 : index
    %c0_34 = arith.constant 0 : index
    %60 = vector.load %arg14[%c1_32, %c0_33, %c0_34] : memref<10x24x128xf32, #tpu.memory_space<vmem>>, vector<8x16x128xf32>
    %61 = vector.extract_strided_slice %37 {offsets = [1, 0, 0], sizes = [1, 1, 128], strides = [1, 1, 1]} : vector<3x3x128xf32> to vector<1x1x128xf32>
    %62 = vector.shape_cast %61 : vector<1x1x128xf32> to vector<128xf32>
    %63 = vector.shape_cast %62 : vector<128xf32> to vector<1x1x128xf32>
    %64 = vector.broadcast %63 : vector<1x1x128xf32> to vector<8x16x128xf32>
    %65 = arith.mulf %60, %64 : vector<8x16x128xf32>
    %66 = arith.addf %59, %65 : vector<8x16x128xf32>
    %c1_35 = arith.constant 1 : index
    %c1_36 = arith.constant 1 : index
    %c0_37 = arith.constant 0 : index
    %67 = vector.load %arg14[%c1_35, %c1_36, %c0_37] : memref<10x24x128xf32, #tpu.memory_space<vmem>>, vector<8x16x128xf32>
    %68 = vector.extract_strided_slice %37 {offsets = [1, 1, 0], sizes = [1, 1, 128], strides = [1, 1, 1]} : vector<3x3x128xf32> to vector<1x1x128xf32>
    %69 = vector.shape_cast %68 : vector<1x1x128xf32> to vector<128xf32>
    %70 = vector.shape_cast %69 : vector<128xf32> to vector<1x1x128xf32>
    %71 = vector.broadcast %70 : vector<1x1x128xf32> to vector<8x16x128xf32>
    %72 = arith.mulf %67, %71 : vector<8x16x128xf32>
    %73 = arith.addf %66, %72 : vector<8x16x128xf32>
    %c1_38 = arith.constant 1 : index
    %c2_39 = arith.constant 2 : index
    %c0_40 = arith.constant 0 : index
    %74 = vector.load %arg14[%c1_38, %c2_39, %c0_40] : memref<10x24x128xf32, #tpu.memory_space<vmem>>, vector<8x16x128xf32>
    %75 = vector.extract_strided_slice %37 {offsets = [1, 2, 0], sizes = [1, 1, 128], strides = [1, 1, 1]} : vector<3x3x128xf32> to vector<1x1x128xf32>
    %76 = vector.shape_cast %75 : vector<1x1x128xf32> to vector<128xf32>
    %77 = vector.shape_cast %76 : vector<128xf32> to vector<1x1x128xf32>
    %78 = vector.broadcast %77 : vector<1x1x128xf32> to vector<8x16x128xf32>
    %79 = arith.mulf %74, %78 : vector<8x16x128xf32>
    %80 = arith.addf %73, %79 : vector<8x16x128xf32>
    %c2_41 = arith.constant 2 : index
    %c0_42 = arith.constant 0 : index
    %c0_43 = arith.constant 0 : index
    %81 = vector.load %arg14[%c2_41, %c0_42, %c0_43] : memref<10x24x128xf32, #tpu.memory_space<vmem>>, vector<8x16x128xf32>
    %82 = vector.extract_strided_slice %37 {offsets = [2, 0, 0], sizes = [1, 1, 128], strides = [1, 1, 1]} : vector<3x3x128xf32> to vector<1x1x128xf32>
    %83 = vector.shape_cast %82 : vector<1x1x128xf32> to vector<128xf32>
    %84 = vector.shape_cast %83 : vector<128xf32> to vector<1x1x128xf32>
    %85 = vector.broadcast %84 : vector<1x1x128xf32> to vector<8x16x128xf32>
    %86 = arith.mulf %81, %85 : vector<8x16x128xf32>
    %87 = arith.addf %80, %86 : vector<8x16x128xf32>
    %c2_44 = arith.constant 2 : index
    %c1_45 = arith.constant 1 : index
    %c0_46 = arith.constant 0 : index
    %88 = vector.load %arg14[%c2_44, %c1_45, %c0_46] : memref<10x24x128xf32, #tpu.memory_space<vmem>>, vector<8x16x128xf32>
    %89 = vector.extract_strided_slice %37 {offsets = [2, 1, 0], sizes = [1, 1, 128], strides = [1, 1, 1]} : vector<3x3x128xf32> to vector<1x1x128xf32>
    %90 = vector.shape_cast %89 : vector<1x1x128xf32> to vector<128xf32>
    %91 = vector.shape_cast %90 : vector<128xf32> to vector<1x1x128xf32>
    %92 = vector.broadcast %91 : vector<1x1x128xf32> to vector<8x16x128xf32>
    %93 = arith.mulf %88, %92 : vector<8x16x128xf32>
    %94 = arith.addf %87, %93 : vector<8x16x128xf32>
    %c2_47 = arith.constant 2 : index
    %c2_48 = arith.constant 2 : index
    %c0_49 = arith.constant 0 : index
    %95 = vector.load %arg14[%c2_47, %c2_48, %c0_49] : memref<10x24x128xf32, #tpu.memory_space<vmem>>, vector<8x16x128xf32>
    %96 = vector.extract_strided_slice %37 {offsets = [2, 2, 0], sizes = [1, 1, 128], strides = [1, 1, 1]} : vector<3x3x128xf32> to vector<1x1x128xf32>
    %97 = vector.shape_cast %96 : vector<1x1x128xf32> to vector<128xf32>
    %98 = vector.shape_cast %97 : vector<128xf32> to vector<1x1x128xf32>
    %99 = vector.broadcast %98 : vector<1x1x128xf32> to vector<8x16x128xf32>
    %100 = arith.mulf %95, %99 : vector<8x16x128xf32>
    %101 = arith.addf %94, %100 : vector<8x16x128xf32>
    %c0_50 = arith.constant 0 : index
    %c0_51 = arith.constant 0 : index
    %102 = vector.load %arg7[%c0_50, %c0_51] : memref<1x128xf32, #tpu.memory_space<vmem>>, vector<1x128xf32>
    %103 = vector.shape_cast %102 : vector<1x128xf32> to vector<1x1x128xf32>
    %104 = vector.broadcast %103 : vector<1x1x128xf32> to vector<8x16x128xf32>
    %105 = arith.mulf %101, %104 : vector<8x16x128xf32>
    %c0_52 = arith.constant 0 : index
    %c0_53 = arith.constant 0 : index
    %106 = vector.load %arg8[%c0_52, %c0_53] : memref<1x128xf32, #tpu.memory_space<vmem>>, vector<1x128xf32>
    %107 = vector.shape_cast %106 : vector<1x128xf32> to vector<1x1x128xf32>
    %108 = vector.broadcast %107 : vector<1x1x128xf32> to vector<8x16x128xf32>
    %109 = arith.addf %105, %108 : vector<8x16x128xf32>
    %cst_54 = arith.constant 0.000000e+00 : f32
    %cst_55 = arith.constant 6.000000e+00 : f32
    %110 = vector.broadcast %cst_54 : f32 to vector<8x16x128xf32>
    %111 = arith.maximumf %110, %109 : vector<8x16x128xf32>
    %112 = vector.broadcast %cst_55 : f32 to vector<8x16x128xf32>
    %113 = arith.minimumf %112, %111 : vector<8x16x128xf32>
    %114 = vector.shape_cast %113 : vector<8x16x128xf32> to vector<128x128xf32>
    %c0_56 = arith.constant 0 : index
    %c0_57 = arith.constant 0 : index
    %115 = vector.load %arg9[%c0_56, %c0_57] : memref<128x128xf32, #tpu.memory_space<vmem>>, vector<128x128xf32>
    %cst_58 = arith.constant dense<0.000000e+00> : vector<128x128xf32>
    %116 = tpu.matmul %114, %115, %cst_58 {dimension_numbers = #tpu.dot_dimension_numbers<[1], [0], [0], [1], [0, 0, 1, 1], [], []>} : vector<128x128xf32>, vector<128x128xf32>, vector<128x128xf32> -> vector<128x128xf32>
    %c0_59 = arith.constant 0 : index
    %c0_60 = arith.constant 0 : index
    %117 = vector.load %arg10[%c0_59, %c0_60] : memref<1x128xf32, #tpu.memory_space<vmem>>, vector<1x128xf32>
    %118 = vector.broadcast %117 : vector<1x128xf32> to vector<128x128xf32>
    %119 = arith.mulf %116, %118 : vector<128x128xf32>
    %c0_61 = arith.constant 0 : index
    %c0_62 = arith.constant 0 : index
    %120 = vector.load %arg11[%c0_61, %c0_62] : memref<1x128xf32, #tpu.memory_space<vmem>>, vector<1x128xf32>
    %121 = vector.broadcast %120 : vector<1x128xf32> to vector<128x128xf32>
    %122 = arith.addf %119, %121 : vector<128x128xf32>
    %c1_63 = arith.constant 1 : index
    %c1_64 = arith.constant 1 : index
    %c0_65 = arith.constant 0 : index
    %123 = vector.load %arg13[%c1_63, %c1_64, %c0_65] : memref<10x24x128xf32, #tpu.memory_space<vmem>>, vector<8x16x128xf32>
    %124 = vector.shape_cast %123 : vector<8x16x128xf32> to vector<128x128xf32>
    %125 = arith.addf %122, %124 : vector<128x128xf32>
    %126 = vector.shape_cast %125 : vector<128x128xf32> to vector<8x16x128xf32>
    %c0_66 = arith.constant 0 : index
    %c0_67 = arith.constant 0 : index
    %c0_68 = arith.constant 0 : index
    %c0_69 = arith.constant 0 : index
    %127 = vector.load %arg12[%c0_66, %c0_67, %c0_68, %c0_69] : memref<1x8x16x128xf32, #tpu.memory_space<vmem>>, vector<1x8x16x128xf32>
    %128 = vector.shape_cast %127 : vector<1x8x16x128xf32> to vector<8x16x128xf32>
    %129 = vector.shape_cast %126 : vector<8x16x128xf32> to vector<1x8x16x128xf32>
    tpu.vector_store %arg12[%c0_66, %c0_67, %c0_68, %c0_69], %129 {strides = array<i32>} : memref<1x8x16x128xf32, #tpu.memory_space<vmem>>, vector<1x8x16x128xf32>,
    return
  }
  func.func @transform_1(%arg0: i32, %arg1: i32) -> (i32, i32) {
    %c0_i32 = arith.constant 0 : i32
    %c0_i32_0 = arith.constant 0 : i32
    %c0_i32_1 = arith.constant 0 : i32
    return %c0_i32, %c0_i32_0 : i32, i32
  }
  func.func @transform_2(%arg0: i32, %arg1: i32) -> (i32, i32) {
    %c0_i32 = arith.constant 0 : i32
    %c0_i32_0 = arith.constant 0 : i32
    %c0_i32_1 = arith.constant 0 : i32
    return %c0_i32, %c0_i32_0 : i32, i32
  }
  func.func @transform_3(%arg0: i32, %arg1: i32) -> (i32, i32) {
    %c0_i32 = arith.constant 0 : i32
    %c0_i32_0 = arith.constant 0 : i32
    %c0_i32_1 = arith.constant 0 : i32
    return %c0_i32, %c0_i32_0 : i32, i32
  }
  func.func @transform_4(%arg0: i32, %arg1: i32) -> (i32, i32, i32) {
    %c0_i32 = arith.constant 0 : i32
    %c0_i32_0 = arith.constant 0 : i32
    %c0_i32_1 = arith.constant 0 : i32
    %c0_i32_2 = arith.constant 0 : i32
    return %c0_i32, %c0_i32_0, %c0_i32_1 : i32, i32, i32
  }
  func.func @transform_5(%arg0: i32, %arg1: i32) -> (i32, i32) {
    %c0_i32 = arith.constant 0 : i32
    %c0_i32_0 = arith.constant 0 : i32
    %c0_i32_1 = arith.constant 0 : i32
    return %c0_i32, %c0_i32_0 : i32, i32
  }
  func.func @transform_6(%arg0: i32, %arg1: i32) -> (i32, i32) {
    %c0_i32 = arith.constant 0 : i32
    %c0_i32_0 = arith.constant 0 : i32
    %c0_i32_1 = arith.constant 0 : i32
    return %c0_i32, %c0_i32_0 : i32, i32
  }
  func.func @transform_7(%arg0: i32, %arg1: i32) -> (i32, i32) {
    %c0_i32 = arith.constant 0 : i32
    %c0_i32_0 = arith.constant 0 : i32
    %c0_i32_1 = arith.constant 0 : i32
    return %c0_i32, %c0_i32_0 : i32, i32
  }
  func.func @transform_8(%arg0: i32, %arg1: i32) -> (i32, i32) {
    %c0_i32 = arith.constant 0 : i32
    %c0_i32_0 = arith.constant 0 : i32
    %c0_i32_1 = arith.constant 0 : i32
    return %c0_i32, %c0_i32_0 : i32, i32
  }
  func.func @transform_9(%arg0: i32, %arg1: i32) -> (i32, i32) {
    %c0_i32 = arith.constant 0 : i32
    %c0_i32_0 = arith.constant 0 : i32
    %c0_i32_1 = arith.constant 0 : i32
    return %c0_i32, %c0_i32_0 : i32, i32
  }
  func.func @transform_10(%arg0: i32, %arg1: i32) -> (i32, i32, i32, i32) {
    %c0_i32 = arith.constant 0 : i32
    %c0_i32_0 = arith.constant 0 : i32
    %c0_i32_1 = arith.constant 0 : i32
    return %arg0, %arg1, %c0_i32, %c0_i32_0 : i32, i32, i32, i32
  }
}

</mosaic_0001>

<bundles_post_ra>
// kernel: tpu_custom_call.1
= control target key start
LH: loop header
LB: loop body
LE: loop exit
PB: predicated region body
PF: predicated region fallthrough
CT: control target
= control target key end

     0   :  { %s3252_s0 = inlined_call_operand.hbm [shape: f32[36,24,128], index: 0, kind: input, shape index: {}]   ;;  %s3253_s1 = inlined_call_operand.hbm [shape: f32[128,128], index: 1, kind: input, shape index: {}]   ;;  %s3254_s2 = inlined_call_operand.vmem [shape: f32[1,128], index: 2, kind: input, shape index: {}]   ;;  %s3255_s3 = inlined_call_operand.vmem [shape: f32[1,128], index: 3, kind: input, shape index: {}]   ;;  %s3256_s4 = inlined_call_operand.vmem [shape: f32[3,3,128], index: 4, kind: input, shape index: {}]   ;;  %s3257_s5 = inlined_call_operand.vmem [shape: f32[1,128], index: 5, kind: input, shape index: {}]   ;;  %s3258_s6 = inlined_call_operand.vmem [shape: f32[1,128], index: 6, kind: input, shape index: {}]   ;;  %s3259_s7 = inlined_call_operand.hbm [shape: f32[128,128], index: 7, kind: input, shape index: {}]   ;;  %s3260_s8 = inlined_call_operand.vmem [shape: f32[1,128], index: 8, kind: input, shape index: {}]   ;;  %s3261_s9 = inlined_call_operand.vmem [shape: f32[1,128], index: 9, kind: input, shape index: {}]   ;;  %s3262_s10 = inlined_call_operand.hbm [shape: f32[2,16,16,128], index: 10, kind: output, shape index: {}]  }
   0x1   :  { %3277 = sst [smem:[#allocation28_spill]] %s3262_s10 }
   0x2   :  { %15 = vsyncpa [#allocation6], 0 }
   0x3   :  { %16 = vsyncpa [#allocation9], 0 }
   0x4   :  { %17 = vsyncpa [#allocation7], 0 }
   0x5   :  { %19 = vsyncpa [#allocation7 + $0x1], 0  ;;  %s2442_s13 = smov 0   ;;  %s2444_s14 = smov 0  }
   0x6   :  { %s2446_s15 = smov 0   ;;  %s2448_s16 = smov 0  }
   0x7   :  { %s2450_s17 = smov 0   ;;  %s2452_s18 = smov 0  }
   0x8   :  { %s2454_s19 = smov 0   ;;  %s2456_s20 = smov 0  }
   0x9 LB: > { %3278 = sst [smem:[#allocation19_spill]] %s2347_s13  ;;  %s1788_s21 = sadd.s32 4294967295, %s2375_s20   ;;  %s2375_s20 = sphi %s2456_s20, %s25_s20   ;;  %s2371_s19 = sphi %s2454_s19, %s3305_s19   ;;  %s2367_s18 = sphi %s2452_s18, %s3304_s18   ;;  %s2363_s17 = sphi %s2450_s17, %s3303_s17   ;;  %s2359_s16 = sphi %s2448_s16, %s3302_s16   ;;  %s2355_s15 = sphi %s2446_s15, %s3308_s15   ;;  %s2351_s14 = sphi %s2444_s14, %s3307_s14   ;;  %s2347_s13 = sphi %s2442_s13, %s3306_s13  }
   0xa   : > { %3279 = sst [smem:[#allocation20_spill]] %s2355_s15  ;;  %s1789_s22 = sadd.s32 4294967294, %s2375_s20  }
   0xb   : > { %3280 = sst [smem:[#allocation21_spill]] %s2367_s18  ;;  %s34_s23 = sadd.s32 1, %s2367_s18 }
   0xc   : > { %3281 = sst [smem:[#allocation22_spill]] %s2371_s19  ;;  %s37_s24 = sadd.s32 1, %s2371_s19 }
   0xd   : > { %3282 = sst [smem:[#allocation23_spill]] %s2375_s20  ;;  %p35_p0 = scmp.ge.s32.totalorder %s34_s23, 2 }
   0xe   : > { %s235_s25 = sadd.s32 1, %s2355_s15  ;;  %p245_p1 = scmp.ne.s32.totalorder %s2355_s15, %s2351_s14 }
   0xf   : > { %p246_p2 = scmp.eq.s32.totalorder %s1788_s21, 3  ;;  %s3310_s23 = smov (%p35_p0, %s34_s23), 0 }
  0x10   : > { %3283 = sst [smem:[#allocation24_spill]] %s3310_s23  ;;  %s3312_s24 = smov (!%p35_p0, %s37_s24), %s2371_s19 }
  0x11   : > { %s231_s26 = ssub.s32 %s2367_s18, %s3310_s23  ;;  %p2494_p3 = por %p246_p2, %p245_p1 }
  0x12   : > { %p39_p4 = scmp.ge.s32.totalorder %s3312_s24, 2  ;;  %p251_p5 = scmp.ne.s32.totalorder %s2351_s14, %s2347_s13 }
  0x13   : > { %s3284_s27 = scalar_select %p2494_p3, 1, 0 }
  0x14   : > { %p252_p6 = scmp.eq.s32.totalorder %s1789_s22, 3  ;;  %p1790_p7 = scmp.ge.s32.totalorder %s2375_s20, 1 }
  0x15   : > { %s3314_s24 = smov (%p39_p4, %s3312_s24), 0  ;;  %p259_p9 = scmp.lt.s32.totalorder %s2375_s20, 5 }
  0x16   : > { %3285 = sst [smem:[#allocation25_spill]] %s3314_s24  ;;  %p2503_p8 = por %p252_p6, %p251_p5 }
  0x17   : > { %s230_s29 = ssub.s32 %s2371_s19, %s3314_s24  ;;  %p2510_p10 = pnand %p1790_p7, %p259_p9 }
  0x18   : > { %s3286_s28 = scalar_select %p2503_p8, 1, 0 }
  0x19   : > { %s232_s30 = sor.u32 %s231_s26, %s230_s29  ;;  %p2514_p12 = scmp.eq.s32.totalorder %s1788_s21, 0 }
  0x1a   : > { %3287 = sst [smem:[#allocation26_spill]] %s3286_s28  ;;  %p233_p11 = scmp.eq.s32.totalorder %s232_s30, 0 }
  0x1b   : > { %s3288_s11 = scalar_select %p2510_p10, 1, 0 }
  0x1c   : > { %s3289_s12 = scalar_select %p2514_p12, 1, 0 }
  0x1d   : > { %p2102_p13 = pneg %p2510_p10  ;;  %s2377_s23 = smov [#allocation5]  }
  0x1e   : > { %s2521_s22 = scalar_select %p233_p11, %s2355_s15, %s235_s25  }
  0x1f   : > { %s271_s18 = sshll.u32 %s2377_s23, 4  ;;  %p2525_p0 = pnand %p2514_p12, %p2102_p13  ;;  %s272_s18 = int_to_ptr.vmem [resolvable:$true] %s271_s18 }
  0x20   : > { %3290 = sst [smem:[#allocation27_spill]] %s2521_s22  ;;  %s2191_s30 = scalar_lea.hbm %s3253_s1, 2048 }
  0x21   : > { %p2192_p1 = scmp.ne.s32.totalorder %s3253_s1, %s2191_s30  ;;  %p2193_p2 = pneg %p2525_p0 }
  0x22   : > { %p2198_p6 = scmp.lt.u32.totalorder %s2191_s30, %s3253_s1 }
  0x23   : > { %p2194_p4 = pnand %p2193_p2, %p2192_p1 }
  0x25   : > { %p2195_p5 = pneg %p2194_p4 }
  0x27   : > { %p2200_p7 = pnand %p2198_p6, %p2195_p5 }
  0x29   : > { %2203 = shalt.err (!%p2200_p7)
}
  0x2a   : > { %s2204_s22 = scalar_lea.vmem %s272_s18, 2048  ;;  %p2212_p8 = scmp.lt.s32.totalorder %s272_s18, %s272_s18 }
  0x2b   : > { %p2205_p9 = scmp.ne.s32.totalorder %s272_s18, %s2204_s22  ;;  %p2213_p3 = scmp.lt.s32.totalorder %s2204_s22, %s2204_s22 }
  0x2d   : > { %p2207_p11 = pnand %p2205_p9, %p2193_p2  ;;  %p2214_p12 = por %p2213_p3, %p2212_p8 }
  0x2f   : > { %p2208_p13 = pneg %p2207_p11 }
  0x31   : > { %p2215_p10 = pnand %p2214_p12, %p2208_p13 }
  0x33   : > { %2218 = shalt.err (!%p2215_p10)
}
  0x34   : > { %s2378_s19 = smov 128   ;;  %s2379_s24 = smov 8  }
  0x35   : > { %2105 = dma.hbm_to_vmem [thread:$0]  (!%p2525_p0), %s3253_s1, 2048, %s272_s18, [#allocation6], %s2378_s19, %s2378_s19, %s2379_s24  }
  0x36   : > { %s2380_s30 = smov [#allocation8]   ;;  %s2219_s28 = scalar_lea.hbm %s3259_s7, 2048 }
  0x37   : > { %s299_s23 = sshll.u32 %s2380_s30, 4  ;;  %p2220_p3 = scmp.ne.s32.totalorder %s3259_s7, %s2219_s28  ;;  %s300_s23 = int_to_ptr.vmem [resolvable:$true] %s299_s23 }
  0x38   : > { %p2226_p12 = scmp.lt.u32.totalorder %s2219_s28, %s3259_s7 }
  0x39   : > { %p2222_p8 = pnand %p2220_p3, %p2193_p2 }
  0x3b   : > { %p2223_p10 = pneg %p2222_p8 }
  0x3d   : > { %p2228_p1 = pnand %p2226_p12, %p2223_p10 }
  0x3f   : > { %2231 = shalt.err (!%p2228_p1)
}
  0x40   : > { %s2232_s18 = scalar_lea.vmem %s300_s23, 2048  ;;  %p2240_p7 = scmp.lt.s32.totalorder %s300_s23, %s300_s23 }
  0x41   : > { %p2233_p4 = scmp.ne.s32.totalorder %s300_s23, %s2232_s18  ;;  %p2241_p9 = scmp.lt.s32.totalorder %s2232_s18, %s2232_s18 }
  0x43   : > { %p2235_p5 = pnand %p2233_p4, %p2193_p2  ;;  %p2242_p11 = por %p2241_p9, %p2240_p7 }
  0x45   : > { %p2236_p6 = pneg %p2235_p5 }
  0x47   : > { %p2243_p13 = pnand %p2242_p11, %p2236_p6 }
  0x49   : > { %2246 = shalt.err (!%p2243_p13)
}
  0x4a   : > { %2108 = dma.hbm_to_vmem [thread:$0]  (!%p2525_p0), %s3259_s7, 2048, %s300_s23, [#allocation9], %s2378_s19, %s2378_s19, %s2379_s24  }
  0x4b   : > { %p3292_p3 = scmp.ne.s32.totalorder %s3288_s11, 0 }
  0x4c   : > { %p3293_p8 = scmp.ne.s32.totalorder (!%p3292_p3), %s3289_s12, 0 }
  0x4d   : > { %321 = sbr.rel (%p3292_p3) target bundleno = 776 (0x308), region = 56 }
  0x54   : > { %2332 = dma.done.wait (%p3293_p8), [#allocation6], 2048  }
  0x55   : > { %2334 = vsyncadd (%p3293_p8), [#allocation6], 4294965248 }
  0x56   : > { %2336 = dma.done.wait (%p3293_p8), [#allocation9], 2048  }
  0x57   : > { %2338 = vsyncadd (%p3293_p8), [#allocation9], 4294965248  ;;  %s353_s10 = sand.u32 1, %s2351_s14   ;;  %s357_s20 = smul.u32 18, %s2363_s17 }
  0x58   : > { %s1796_s28 = sshll.u32 %s353_s10, 7  ;;  %s1797_s11 = sshll.u32 %s2359_s16, 3 }
  0x59   : > { %s359_s26 = sadd.s32 %s1797_s11, %s357_s20  ;;  %s2381_s24 = smov [#allocation2]  }
  0x5a   : > { %s1815_s19 = smul.u32 384, %s359_s26  ;;  %s370_s29 = sshll.u32 %s2381_s24, 4  ;;  %s371_s29 = int_to_ptr.vmem [resolvable:$true] %s370_s29 }
  0x5b   : > { %s2249_s18 = scalar_lea.hbm %s3252_s0, 13824 }
  0x5c   : > { %s362_s23 = scalar_lea.hbm %s3252_s0, %s1815_s19 }
  0x5d   : > { %s2247_s12 = scalar_lea.hbm %s362_s23, 3840  ;;  %p2250_p2 = scmp.lt.u32.totalorder %s362_s23, %s3252_s0 }
  0x5e   : > { %p2248_p0 = scmp.ne.s32.totalorder %s362_s23, %s2247_s12  ;;  %p2251_p10 = scmp.lt.u32.totalorder %s2249_s18, %s2247_s12 }
  0x5f   : > { %p2253_p1 = scmp.lt.u32.totalorder %s2247_s12, %s362_s23 }
  0x60   : > { %p2252_p12 = por %p2251_p10, %p2250_p2 }
  0x62   : > { %p2254_p4 = por %p2253_p1, %p2252_p12 }
  0x64   : > { %p2255_p5 = pnand %p2254_p4, %p2248_p0 }
  0x66   : > { %2258 = shalt.err (!%p2255_p5)  }
  0x67   : > { %s2259_s20 = scalar_lea.vmem %s371_s29, 3840  ;;  %p2264_p7 = scmp.lt.s32.totalorder %s371_s29, %s371_s29 }
  0x68   : > { %p2260_p6 = scmp.ne.s32.totalorder %s371_s29, %s2259_s20  ;;  %p2265_p9 = scmp.lt.s32.totalorder %s2259_s20, %s2259_s20 }
  0x6a   : > { %p2266_p11 = por %p2265_p9, %p2264_p7 }
  0x6c   : > { %p2267_p13 = pnand %p2266_p11, %p2260_p6 }
  0x6e   : > { %2270 = shalt.err (!%p2267_p13)  }
  0x6f   : > { %373 = dma.hbm_to_vmem [thread:$0]  %s362_s23, 3840, %s371_s29, [#allocation4] }
  0x70   : > { %s2595_s11 = scalar_lea.vmem [#allocation10], %s1796_s28 }
  0x71   : > { %2339 = dma.done.wait [#allocation4], 3840 }
  0x72   : > { %2340 = vsyncadd [#allocation4], 4294963456  ;;  %v408_v0 = vld [vmem:[#allocation5] sm:$0xff]  ;;  %v409_v1 = vld [vmem:[#allocation5 + $0x8] sm:$0xff]  ;;  %v773_v55 = vlaneseq  ;;  %p1801_p3 = scmp.ne.s32.totalorder %s2359_s16, 0 }
  0x73   : > { %v410_v2 = vld [vmem:[#allocation5 + $0x10] sm:$0xff]  ;;  %v2028_v3 = vpack.c.bf16 %v409_v1, %v408_v0  ;;  %v411_v4 = vld [vmem:[#allocation5 + $0x18] sm:$0xff]  ;;  %v412_v6 = vld [vmem:[#allocation5 + $0x20] sm:$0xff] }
  0x74   : > { %v2032_v5 = vpack.c.bf16 %v411_v4, %v410_v2  ;;  %v413_v7 = vld [vmem:[#allocation5 + $0x28] sm:$0xff]  ;;  %v378_v9 = vld [vmem:[#allocation2] sm:$0xff]  ;;  %v414_v10 = vld [vmem:[#allocation5 + $0x30] sm:$0xff]  ;;  %v2610_v62 = vshrl.u32 %v773_v55, 7 }
  0x75   : > { %2029 = vmatprep.subr.bf16.mxu0 %v2028_v3  ;;  %v2036_v8 = vpack.c.bf16 %v413_v7, %v412_v6  ;;  %v415_v11 = vld [vmem:[#allocation5 + $0x38] sm:$0xff]  ;;  %1927 = vmatprep.mubr.f32.mxu0 %v378_v9  ;;  %v416_v13 = vld [vmem:[#allocation5 + $0x40] sm:$0xff]  ;;  %v417_v14 = vld [vmem:[#allocation5 + $0x48] sm:$0xff] }
  0x76   : > { %2031 = vmatpush3.bf16.msra.mxu0 %v2028_v3  ;;  %v2040_v12 = vpack.c.bf16 %v415_v11, %v414_v10  ;;  %v2044_v15 = vpack.c.bf16 %v417_v14, %v416_v13  ;;  %v418_v16 = vld [vmem:[#allocation5 + $0x50] sm:$0xff]  ;;  %v419_v17 = vld [vmem:[#allocation5 + $0x58] sm:$0xff]  ;;  %v420_v19 = vld [vmem:[#allocation5 + $0x60] sm:$0xff]  ;;  %vm777_vm0 = vcmp.ge.s32.totalorder %v2610_v62, 1 }
  0x77   : > { %2033 = vmatprep.subr.bf16.mxu0 %v2032_v5  ;;  %v2048_v18 = vpack.c.bf16 %v419_v17, %v418_v16  ;;  %v421_v20 = vld [vmem:[#allocation5 + $0x68] sm:$0xff]  ;;  %v422_v22 = vld [vmem:[#allocation5 + $0x70] sm:$0xff]  ;;  %v423_v23 = vld [vmem:[#allocation5 + $0x78] sm:$0xff] }
  0x78   : > { %v2052_v21 = vpack.c.bf16 %v421_v20, %v420_v19  ;;  %v2056_v24 = vpack.c.bf16 %v423_v23, %v422_v22  ;;  %v379_v25 = vld [vmem:[#allocation2 + $0x8] sm:$0xff]  ;;  %v380_v26 = vld [vmem:[#allocation2 + $0x10] sm:$0xff]  ;;  %v381_v27 = vld [vmem:[#allocation2 + $0x18] sm:$0xff] }
  0x79   : > { %v382_v28 = vld [vmem:[#allocation2 + $0x20] sm:$0xff]  ;;  %v383_v29 = vld [vmem:[#allocation2 + $0x28] sm:$0xff]  ;;  %v384_v30 = vld [vmem:[#allocation2 + $0x30] sm:$0xff] }
  0x7a   : > { %2035 = vmatpush3.bf16.msra.mxu0 %v2032_v5  ;;  %v385_v31 = vld [vmem:[#allocation2 + $0x38] sm:$0xff]  ;;  %v386_v32 = vld [vmem:[#allocation2 + $0x40] sm:$0xff]  ;;  %v387_v33 = vld [vmem:[#allocation2 + $0x48] sm:$0xff] }
  0x7b   : > { %2037 = vmatprep.subr.bf16.mxu0 %v2036_v8  ;;  %v388_v34 = vld [vmem:[#allocation2 + $0x50] sm:$0xff]  ;;  %v389_v35 = vld [vmem:[#allocation2 + $0x58] sm:$0xff]  ;;  %v390_v36 = vld [vmem:[#allocation2 + $0x60] sm:$0xff] }
  0x7c   : > { %v391_v37 = vld [vmem:[#allocation2 + $0x68] sm:$0xff]  ;;  %v392_v38 = vld [vmem:[#allocation2 + $0x70] sm:$0xff]  ;;  %v393_v39 = vld [vmem:[#allocation2 + $0x78] sm:$0xff] }
  0x7d   : > { %v394_v40 = vld [vmem:[#allocation2 + $0x80] sm:$0xff]  ;;  %v395_v41 = vld [vmem:[#allocation2 + $0x88] sm:$0xff]  ;;  %v396_v42 = vld [vmem:[#allocation2 + $0x90] sm:$0xff] }
  0x7e   : > { %2039 = vmatpush3.bf16.msra.mxu0 %v2036_v8  ;;  %v397_v43 = vld [vmem:[#allocation2 + $0x98] sm:$0xff]  ;;  %v398_v44 = vld [vmem:[#allocation2 + $0xa0] sm:$0xff]  ;;  %v399_v45 = vld [vmem:[#allocation2 + $0xa8] sm:$0xff]  ;;  %v2618_v8 = vadd.s32 16, %v2610_v62 }
  0x7f   : > { %2041 = vmatprep.subr.bf16.mxu0 %v2040_v12  ;;  %v400_v46 = vld [vmem:[#allocation2 + $0xb0] sm:$0xff]  ;;  %v401_v47 = vld [vmem:[#allocation2 + $0xb8] sm:$0xff]  ;;  %v402_v48 = vld [vmem:[#allocation2 + $0xc0] sm:$0xff] }
  0x80   : > { %v403_v49 = vld [vmem:[#allocation2 + $0xc8] sm:$0xff]  ;;  %v404_v50 = vld [vmem:[#allocation2 + $0xd0] sm:$0xff]  ;;  %v405_v51 = vld [vmem:[#allocation2 + $0xd8] sm:$0xff]  ;;  %vm782_vm1 = vcmp.le.s32.totalorder %v2618_v8, 16 }
  0x81   : > { %v406_v52 = vld [vmem:[#allocation2 + $0xe0] sm:$0xff]  ;;  %v407_v53 = vld [vmem:[#allocation2 + $0xe8] sm:$0xff] }
  0x82   : > { %2043 = vmatpush3.bf16.msra.mxu0 %v2040_v12  ;;  %v2600_v54 = vld [vmem:[%s3254_s2] ss:$0 sm:$0xff] }
  0x83   : > { %2045 = vmatprep.subr.bf16.mxu0 %v2044_v15  ;;  %v2605_v57 = vld [vmem:[%s3255_s3] ss:$0 sm:$0xff] }
  0x86   : > { %2047 = vmatpush3.bf16.msra.mxu0 %v2044_v15 }
  0x87   : > { %2049 = vmatprep.subr.bf16.mxu0 %v2048_v18 }
  0x8a   : > { %2051 = vmatpush3.bf16.msra.mxu0 %v2048_v18 }
  0x8b   : > { %2053 = vmatprep.subr.bf16.mxu0 %v2052_v21 }
  0x8e   : > { %2055 = vmatpush3.bf16.msra.mxu0 %v2052_v21 }
  0x8f   : > { %2057 = vmatprep.subr.bf16.mxu0 %v2056_v24 }
  0x92   : > { %2059 = vmatpush3.bf16.msra.mxu0 %v2056_v24 }
  0x95   : > { %1928 = vmatmul.mubr.f32.vlgmr.msra.gmra.mrb[0].mxu0 %v379_v25 }
  0x96   : > { %1930 = vmatprep.mubr.f32.mxu0 %v380_v26 }
  0x99   : > { %1931 = vmatmul.mubr.f32.gmra.mrb[2].mxu0 %v381_v27 }
  0x9a   : > { %1933 = vmatprep.mubr.f32.mxu0 %v382_v28 }
  0x9d   : > { %1934 = vmatmul.mubr.f32.gmra.mrb[4].mxu0 %v383_v29 }
  0x9e   : > { %1936 = vmatprep.mubr.f32.mxu0 %v384_v30 }
  0xa1   : > { %1937 = vmatmul.mubr.f32.gmra.mrb[6].mxu0 %v385_v31 }
  0xa2   : > { %1939 = vmatprep.mubr.f32.mxu0 %v386_v32 }
  0xa5   : > { %1940 = vmatmul.mubr.f32.gmra.mrb[8].mxu0 %v387_v33 }
  0xa6   : > { %1942 = vmatprep.mubr.f32.mxu0 %v388_v34 }
  0xa9   : > { %1943 = vmatmul.mubr.f32.gmra.mrb[10].mxu0 %v389_v35 }
  0xaa   : > { %1945 = vmatprep.mubr.f32.mxu0 %v390_v36 }
  0xad   : > { %1946 = vmatmul.mubr.f32.gmra.mrb[12].mxu0 %v391_v37 }
  0xae   : > { %1948 = vmatprep.mubr.f32.mxu0 %v392_v38 }
  0xb1   : > { %1949 = vmatmul.mubr.f32.gmra.mrb[14].mxu0 %v393_v39 }
  0xb2   : > { %1951 = vmatprep.mubr.f32.mxu0 %v394_v40 }
  0xb5   : > { %1952 = vmatmul.mubr.f32.gmra.mrb[16].mxu0 %v395_v41 }
  0xb6   : > { %1954 = vmatprep.mubr.f32.mxu0 %v396_v42 }
  0xb9   : > { %1955 = vmatmul.mubr.f32.gmra.mrb[18].mxu0 %v397_v43 }
  0xba   : > { %1957 = vmatprep.mubr.f32.mxu0 %v398_v44 }
  0xbd   : > { %1958 = vmatmul.mubr.f32.gmra.mrb[20].mxu0 %v399_v45 }
  0xbe   : > { %1960 = vmatprep.mubr.f32.mxu0 %v400_v46 }
  0xc1   : > { %1961 = vmatmul.mubr.f32.gmra.mrb[22].mxu0 %v401_v47 }
  0xc2   : > { %1963 = vmatprep.mubr.f32.mxu0 %v402_v48 }
  0xc5   : > { %1964 = vmatmul.mubr.f32.gmra.mrb[24].mxu0 %v403_v49 }
  0xc6   : > { %1966 = vmatprep.mubr.f32.mxu0 %v404_v50 }
  0xc9   : > { %1967 = vmatmul.mubr.f32.gmra.mrb[26].mxu0 %v405_v51 }
  0xca   : > { %1969 = vmatprep.mubr.f32.mxu0 %v406_v52 }
  0xcd   : > { %1970 = vmatmul.mubr.f32.gmra.mrb[28].mxu0 %v407_v53 }
 0x168   : > { %v1929_v56 = vpop.f32.mrb[0].mxu0 }
 0x169   : > { %v647_v58 = vmul.f32 %v1929_v56, %v2600_v54  ;;  %v490_v59 = vpop.f32.mrb[1].mxu0 }
 0x16a   : > { %v646_v60 = vmul.f32 %v2600_v54, %v490_v59 }
 0x16b   : > { %v684_v61 = vadd.f32 %v2605_v57, %v647_v58 }
 0x16c   : > { %v683_v63 = vadd.f32 %v2605_v57, %v646_v60  ;;  %v1932_v0 = vpop.f32.mrb[2].mxu0 }
 0x16d   : > { %v714_v1 = vmax.f32 %v684_v61, 0.0  ;;  %v649_v2 = vmul.f32 %v1932_v0, %v2600_v54  ;;  %v500_v3 = vpop.f32.mrb[3].mxu0 }
 0x16e   : > { %v713_v4 = vmax.f32 %v683_v63, 0.0  ;;  %v648_v5 = vmul.f32 %v2600_v54, %v500_v3 }
 0x16f   : > { %v744_v6 = vmin.f32 %v714_v1, 6.0  ;;  %v686_v7 = vadd.f32 %v2605_v57, %v649_v2 }
 0x170   : > { %v743_v9 = vmin.f32 %v713_v4, 6.0  ;;  %v685_v10 = vadd.f32 %v2605_v57, %v648_v5  ;;  %v1935_v11 = vpop.f32.mrb[4].mxu0 }
 0x171   : > { %823 = vst [vmem:[#allocation3 + $0x8] sm:$0xff] %v744_v6  ;;  %v716_v12 = vmax.f32 %v686_v7, 0.0  ;;  %v651_v13 = vmul.f32 %v1935_v11, %v2600_v54  ;;  %v510_v14 = vpop.f32.mrb[5].mxu0 }
 0x172   : > { %v792_v15 = vsel %vm777_vm0, %v743_v9, 0.0  ;;  %v715_v16 = vmax.f32 %v685_v10, 0.0  ;;  %v650_v17 = vmul.f32 %v2600_v54, %v510_v14 }
 0x173   : > { %822 = vst [vmem:[#allocation3] sm:$0xff] %v792_v15  ;;  %v746_v18 = vmin.f32 %v716_v12, 6.0  ;;  %v688_v19 = vadd.f32 %v2605_v57, %v651_v13 }
 0x174   : > { %v745_v20 = vmin.f32 %v715_v16, 6.0  ;;  %v687_v21 = vadd.f32 %v2605_v57, %v650_v17  ;;  %v1938_v22 = vpop.f32.mrb[6].mxu0 }
 0x175   : > { %v795_v23 = vsel %vm777_vm0, %v746_v18, 0.0  ;;  %v718_v24 = vmax.f32 %v688_v19, 0.0  ;;  %v653_v25 = vmul.f32 %v1938_v22, %v2600_v54  ;;  %v520_v26 = vpop.f32.mrb[7].mxu0 }
 0x176   : > { %825 = vst [vmem:[#allocation3 + $0x18] sm:$0xff] %v795_v23  ;;  %v794_v27 = vsel %vm782_vm1, %v745_v20, 0.0  ;;  %v717_v28 = vmax.f32 %v687_v21, 0.0  ;;  %v652_v29 = vmul.f32 %v2600_v54, %v520_v26 }
 0x177   : > { %824 = vst [vmem:[#allocation3 + $0x10] sm:$0xff] %v794_v27  ;;  %v748_v30 = vmin.f32 %v718_v24, 6.0  ;;  %v690_v31 = vadd.f32 %v2605_v57, %v653_v25 }
 0x178   : > { %v747_v32 = vmin.f32 %v717_v28, 6.0  ;;  %v689_v33 = vadd.f32 %v2605_v57, %v652_v29  ;;  %v1941_v34 = vpop.f32.mrb[8].mxu0 }
 0x179   : > { %v797_v35 = vsel %vm782_vm1, %v748_v30, 0.0  ;;  %v720_v36 = vmax.f32 %v690_v31, 0.0  ;;  %v655_v37 = vmul.f32 %v1941_v34, %v2600_v54  ;;  %v530_v38 = vpop.f32.mrb[9].mxu0 }
 0x17a   : > { %827 = vst [vmem:[#allocation3 + $0x28] sm:$0xff] %v797_v35  ;;  %826 = vst [vmem:[#allocation3 + $0x20] sm:$0xff] %v747_v32  ;;  %v719_v39 = vmax.f32 %v689_v33, 0.0  ;;  %v654_v40 = vmul.f32 %v2600_v54, %v530_v38 }
 0x17b   : > { %v750_v41 = vmin.f32 %v720_v36, 6.0  ;;  %v692_v42 = vadd.f32 %v2605_v57, %v655_v37 }
 0x17c   : > { %v749_v43 = vmin.f32 %v719_v39, 6.0  ;;  %v691_v44 = vadd.f32 %v2605_v57, %v654_v40  ;;  %v1944_v45 = vpop.f32.mrb[10].mxu0 }
 0x17d   : > { %829 = vst [vmem:[#allocation3 + $0x38] sm:$0xff] %v750_v41  ;;  %v722_v46 = vmax.f32 %v692_v42, 0.0  ;;  %v657_v47 = vmul.f32 %v1944_v45, %v2600_v54  ;;  %v540_v48 = vpop.f32.mrb[11].mxu0 }
 0x17e   : > { %v798_v49 = vsel %vm777_vm0, %v749_v43, 0.0  ;;  %v721_v50 = vmax.f32 %v691_v44, 0.0  ;;  %v656_v51 = vmul.f32 %v2600_v54, %v540_v48 }
 0x17f   : > { %828 = vst [vmem:[#allocation3 + $0x30] sm:$0xff] %v798_v49  ;;  %v752_v52 = vmin.f32 %v722_v46, 6.0  ;;  %v694_v53 = vadd.f32 %v2605_v57, %v657_v47 }
 0x180   : > { %v751_v55 = vmin.f32 %v721_v50, 6.0  ;;  %v693_v56 = vadd.f32 %v2605_v57, %v656_v51  ;;  %v1947_v58 = vpop.f32.mrb[12].mxu0 }
 0x181   : > { %v801_v59 = vsel %vm777_vm0, %v752_v52, 0.0  ;;  %v724_v60 = vmax.f32 %v694_v53, 0.0  ;;  %v659_v61 = vmul.f32 %v1947_v58, %v2600_v54  ;;  %v550_v63 = vpop.f32.mrb[13].mxu0 }
 0x182   : > { %831 = vst [vmem:[#allocation3 + $0x48] sm:$0xff] %v801_v59  ;;  %v800_v0 = vsel %vm782_vm1, %v751_v55, 0.0  ;;  %v723_v1 = vmax.f32 %v693_v56, 0.0  ;;  %v658_v2 = vmul.f32 %v2600_v54, %v550_v63 }
 0x183   : > { %830 = vst [vmem:[#allocation3 + $0x40] sm:$0xff] %v800_v0  ;;  %v754_v3 = vmin.f32 %v724_v60, 6.0  ;;  %v696_v4 = vadd.f32 %v2605_v57, %v659_v61 }
 0x184   : > { %v753_v5 = vmin.f32 %v723_v1, 6.0  ;;  %v695_v6 = vadd.f32 %v2605_v57, %v658_v2  ;;  %v1950_v7 = vpop.f32.mrb[14].mxu0 }
 0x185   : > { %v803_v9 = vsel %vm782_vm1, %v754_v3, 0.0  ;;  %v726_v10 = vmax.f32 %v696_v4, 0.0  ;;  %v661_v11 = vmul.f32 %v1950_v7, %v2600_v54  ;;  %v560_v12 = vpop.f32.mrb[15].mxu0 }
 0x186   : > { %833 = vst [vmem:[#allocation3 + $0x58] sm:$0xff] %v803_v9  ;;  %832 = vst [vmem:[#allocation3 + $0x50] sm:$0xff] %v753_v5  ;;  %v725_v13 = vmax.f32 %v695_v6, 0.0  ;;  %v660_v14 = vmul.f32 %v2600_v54, %v560_v12 }
 0x187   : > { %v756_v15 = vmin.f32 %v726_v10, 6.0  ;;  %v698_v16 = vadd.f32 %v2605_v57, %v661_v11 }
 0x188   : > { %v755_v17 = vmin.f32 %v725_v13, 6.0  ;;  %v697_v18 = vadd.f32 %v2605_v57, %v660_v14  ;;  %v1953_v19 = vpop.f32.mrb[16].mxu0 }
 0x189   : > { %835 = vst [vmem:[#allocation3 + $0x68] sm:$0xff] %v756_v15  ;;  %v728_v20 = vmax.f32 %v698_v16, 0.0  ;;  %v663_v21 = vmul.f32 %v1953_v19, %v2600_v54  ;;  %v570_v22 = vpop.f32.mrb[17].mxu0 }
 0x18a   : > { %v804_v23 = vsel %vm777_vm0, %v755_v17, 0.0  ;;  %v727_v24 = vmax.f32 %v697_v18, 0.0  ;;  %v662_v25 = vmul.f32 %v2600_v54, %v570_v22 }
 0x18b   : > { %834 = vst [vmem:[#allocation3 + $0x60] sm:$0xff] %v804_v23  ;;  %v758_v26 = vmin.f32 %v728_v20, 6.0  ;;  %v700_v27 = vadd.f32 %v2605_v57, %v663_v21 }
 0x18c   : > { %v757_v28 = vmin.f32 %v727_v24, 6.0  ;;  %v699_v29 = vadd.f32 %v2605_v57, %v662_v25  ;;  %v1956_v30 = vpop.f32.mrb[18].mxu0 }
 0x18d   : > { %v807_v31 = vsel %vm777_vm0, %v758_v26, 0.0  ;;  %v730_v32 = vmax.f32 %v700_v27, 0.0  ;;  %v665_v33 = vmul.f32 %v1956_v30, %v2600_v54  ;;  %v580_v34 = vpop.f32.mrb[19].mxu0 }
 0x18e   : > { %837 = vst [vmem:[#allocation3 + $0x78] sm:$0xff] %v807_v31  ;;  %v806_v35 = vsel %vm782_vm1, %v757_v28, 0.0  ;;  %v729_v36 = vmax.f32 %v699_v29, 0.0  ;;  %v664_v37 = vmul.f32 %v2600_v54, %v580_v34 }
 0x18f   : > { %836 = vst [vmem:[#allocation3 + $0x70] sm:$0xff] %v806_v35  ;;  %v760_v38 = vmin.f32 %v730_v32, 6.0  ;;  %v702_v39 = vadd.f32 %v2605_v57, %v665_v33 }
 0x190   : > { %v759_v40 = vmin.f32 %v729_v36, 6.0  ;;  %v701_v41 = vadd.f32 %v2605_v57, %v664_v37  ;;  %v1959_v42 = vpop.f32.mrb[20].mxu0 }
 0x191   : > { %v809_v43 = vsel %vm782_vm1, %v760_v38, 0.0  ;;  %v732_v44 = vmax.f32 %v702_v39, 0.0  ;;  %v667_v45 = vmul.f32 %v1959_v42, %v2600_v54  ;;  %v590_v46 = vpop.f32.mrb[21].mxu0 }
 0x192   : > { %839 = vst [vmem:[#allocation3 + $0x88] sm:$0xff] %v809_v43  ;;  %838 = vst [vmem:[#allocation3 + $0x80] sm:$0xff] %v759_v40  ;;  %v731_v47 = vmax.f32 %v701_v41, 0.0  ;;  %v666_v48 = vmul.f32 %v2600_v54, %v590_v46 }
 0x193   : > { %v762_v49 = vmin.f32 %v732_v44, 6.0  ;;  %v704_v50 = vadd.f32 %v2605_v57, %v667_v45 }
 0x194   : > { %v761_v51 = vmin.f32 %v731_v47, 6.0  ;;  %v703_v52 = vadd.f32 %v2605_v57, %v666_v48  ;;  %v1962_v53 = vpop.f32.mrb[22].mxu0 }
 0x195   : > { %841 = vst [vmem:[#allocation3 + $0x98] sm:$0xff] %v762_v49  ;;  %v734_v55 = vmax.f32 %v704_v50, 0.0  ;;  %v669_v56 = vmul.f32 %v1962_v53, %v2600_v54  ;;  %v600_v58 = vpop.f32.mrb[23].mxu0 }
 0x196   : > { %v810_v59 = vsel %vm777_vm0, %v761_v51, 0.0  ;;  %v733_v60 = vmax.f32 %v703_v52, 0.0  ;;  %v668_v61 = vmul.f32 %v2600_v54, %v600_v58 }
 0x197   : > { %840 = vst [vmem:[#allocation3 + $0x90] sm:$0xff] %v810_v59  ;;  %v764_v63 = vmin.f32 %v734_v55, 6.0  ;;  %v706_v0 = vadd.f32 %v2605_v57, %v669_v56 }
 0x198   : > { %v763_v1 = vmin.f32 %v733_v60, 6.0  ;;  %v705_v2 = vadd.f32 %v2605_v57, %v668_v61  ;;  %v1965_v3 = vpop.f32.mrb[24].mxu0 }
 0x199   : > { %v813_v4 = vsel %vm777_vm0, %v764_v63, 0.0  ;;  %v736_v5 = vmax.f32 %v706_v0, 0.0  ;;  %v671_v6 = vmul.f32 %v1965_v3, %v2600_v54  ;;  %v610_v7 = vpop.f32.mrb[25].mxu0 }
 0x19a   : > { %843 = vst [vmem:[#allocation3 + $0xa8] sm:$0xff] %v813_v4  ;;  %v812_v9 = vsel %vm782_vm1, %v763_v1, 0.0  ;;  %v735_v10 = vmax.f32 %v705_v2, 0.0  ;;  %v670_v11 = vmul.f32 %v2600_v54, %v610_v7 }
 0x19b   : > { %842 = vst [vmem:[#allocation3 + $0xa0] sm:$0xff] %v812_v9  ;;  %v766_v12 = vmin.f32 %v736_v5, 6.0  ;;  %v708_v13 = vadd.f32 %v2605_v57, %v671_v6 }
 0x19c   : > { %v765_v14 = vmin.f32 %v735_v10, 6.0  ;;  %v707_v15 = vadd.f32 %v2605_v57, %v670_v11  ;;  %v1968_v16 = vpop.f32.mrb[26].mxu0 }
 0x19d   : > { %v815_v17 = vsel %vm782_vm1, %v766_v12, 0.0  ;;  %v738_v18 = vmax.f32 %v708_v13, 0.0  ;;  %v673_v19 = vmul.f32 %v1968_v16, %v2600_v54  ;;  %v620_v20 = vpop.f32.mrb[27].mxu0 }
 0x19e   : > { %845 = vst [vmem:[#allocation3 + $0xb8] sm:$0xff] %v815_v17  ;;  %844 = vst [vmem:[#allocation3 + $0xb0] sm:$0xff] %v765_v14  ;;  %v737_v21 = vmax.f32 %v707_v15, 0.0  ;;  %v672_v22 = vmul.f32 %v2600_v54, %v620_v20 }
 0x19f   : > { %v768_v23 = vmin.f32 %v738_v18, 6.0  ;;  %v710_v24 = vadd.f32 %v2605_v57, %v673_v19 }
 0x1a0   : > { %v767_v25 = vmin.f32 %v737_v21, 6.0  ;;  %v709_v26 = vadd.f32 %v2605_v57, %v672_v22  ;;  %v1971_v27 = vpop.f32.mrb[28].mxu0 }
 0x1a1   : > { %847 = vst [vmem:[#allocation3 + $0xc8] sm:$0xff] %v768_v23  ;;  %v740_v28 = vmax.f32 %v710_v24, 0.0  ;;  %v675_v29 = vmul.f32 %v1971_v27, %v2600_v54  ;;  %v630_v30 = vpop.f32.mrb[29].mxu0 }
 0x1a2   : > { %v816_v31 = vsel %vm777_vm0, %v767_v25, 0.0  ;;  %v739_v32 = vmax.f32 %v709_v26, 0.0  ;;  %v674_v33 = vmul.f32 %v2600_v54, %v630_v30 }
 0x1a3   : > { %846 = vst [vmem:[#allocation3 + $0xc0] sm:$0xff] %v816_v31  ;;  %v770_v34 = vmin.f32 %v740_v28, 6.0  ;;  %v712_v35 = vadd.f32 %v2605_v57, %v675_v29 }
 0x1a4   : > { %v769_v36 = vmin.f32 %v739_v32, 6.0  ;;  %v711_v37 = vadd.f32 %v2605_v57, %v674_v33  ;;  %855 = sbr.rel (%p1801_p3) target bundleno = 427 (0x1ab), region = 72  ;;  %v2382_v57 = vmov (!%p1801_p3), 0.0  }
 0x1a5   : > { %v819_v38 = vsel %vm777_vm0, %v770_v34, 0.0  ;;  %v742_v39 = vmax.f32 %v712_v35, 0.0  ;;  %856 = vst [vmem:[#allocation3] sm:$0xff] (!%p1801_p3), %v2382_v57  ;;  %857 = vst [vmem:[#allocation3 + $0x8] sm:$0xff] (!%p1801_p3), %v2382_v57 }
 0x1a6   : > { %849 = vst [vmem:[#allocation3 + $0xd8] sm:$0xff] %v819_v38  ;;  %v818_v40 = vsel %vm782_vm1, %v769_v36, 0.0  ;;  %v741_v41 = vmax.f32 %v711_v37, 0.0  ;;  %858 = vst [vmem:[#allocation3 + $0x10] sm:$0xff] (!%p1801_p3), %v2382_v57 }
 0x1a7   : > { %848 = vst [vmem:[#allocation3 + $0xd0] sm:$0xff] %v818_v40  ;;  %v772_v42 = vmin.f32 %v742_v39, 6.0 }
 0x1a8   : > { %v771_v43 = vmin.f32 %v741_v41, 6.0 }
 0x1a9   : > { %v821_v54 = vsel %vm782_vm1, %v772_v42, 0.0 }
 0x1aa   : > { %851 = vst [vmem:[#allocation3 + $0xe8] sm:$0xff] %v821_v54  ;;  %850 = vst [vmem:[#allocation3 + $0xe0] sm:$0xff] %v771_v43 }
 0x1ab PF: > { %p1802_p8 = scmp.ne.s32.totalorder %s2359_s16, 1 }
 0x1ac   : > { %v2383_v44 = vmov (!%p1802_p8), 0.0  }
 0x1ad   : > { %862 = sbr.rel (%p1802_p8) target bundleno = 436 (0x1b4), region = 76  ;;  %864 = vst [vmem:[#allocation3 + $0xd8] sm:$0xff] (!%p1802_p8), %v2383_v44  ;;  %865 = vst [vmem:[#allocation3 + $0xe0] sm:$0xff] (!%p1802_p8), %v2383_v44 }
 0x1ae   : > { %866 = vst [vmem:[#allocation3 + $0xe8] sm:$0xff] (!%p1802_p8), %v2383_v44 }
 0x1b4 PF: > { %v1418_v8 = vld [vmem:[#allocation8] sm:$0xff]  ;;  %v1419_v45 = vld [vmem:[#allocation8 + $0x8] sm:$0xff]  ;;  %v1420_v46 = vld [vmem:[#allocation8 + $0x10] sm:$0xff]  ;;  %v888_v56 = vsub.s32 0, %v2610_v62  ;;  %v940_v58 = vsub.s32 1, %v2610_v62  ;;  %v992_v59 = vsub.s32 2, %v2610_v62 }
 0x1b5   : > { %v2060_v47 = vpack.c.bf16 %v1419_v45, %v1418_v8  ;;  %v1421_v48 = vld [vmem:[#allocation8 + $0x18] sm:$0xff]  ;;  %v1422_v49 = vld [vmem:[#allocation8 + $0x20] sm:$0xff]  ;;  %v1423_v50 = vld [vmem:[#allocation8 + $0x28] sm:$0xff]  ;;  %s1816_s24 = sshll.u32 %s2359_s16, 4  ;;  %s1810_s29 = sshll.u32 %s2363_s17, 5 }
 0x1b6   : > { %v2064_v51 = vpack.c.bf16 %v1421_v48, %v1420_v46  ;;  %v1424_v52 = vld [vmem:[#allocation8 + $0x30] sm:$0xff]  ;;  %v1425_v53 = vld [vmem:[#allocation8 + $0x38] sm:$0xff]  ;;  %v1426_v55 = vld [vmem:[#allocation8 + $0x40] sm:$0xff]  ;;  %v2068_v3 = vpack.c.bf16 %v1423_v50, %v1422_v49  ;;  %s1688_s21 = sadd.s32 %s1816_s24, %s1810_s29  ;;  %s1691_s23 = sshll.u32 %s2595_s11, 4  ;;  %s3194_s23 = int_to_ptr.vmem [resolvable:$true] %s1691_s23 }
 0x1b7   : > { %2061 = vmatprep.subr.bf16.mxu1 %v2060_v47  ;;  %v1427_v60 = vld [vmem:[#allocation8 + $0x48] sm:$0xff]  ;;  %v1428_v61 = vld [vmem:[#allocation8 + $0x50] sm:$0xff]  ;;  %v1429_v63 = vld [vmem:[#allocation8 + $0x58] sm:$0xff]  ;;  %v2719_v4 = vpack.c.bf16 %v1425_v53, %v1424_v52  ;;  %s1811_s30 = sshll.u32 %s1688_s21, 7  ;;  %s3294_s12 = sld [smem:[#allocation28_spill]] }
 0x1b8   : > { %2063 = vmatpush3.bf16.msra.mxu1 %v2060_v47  ;;  %v1430_v0 = vld [vmem:[#allocation8 + $0x60] sm:$0xff]  ;;  %v1431_v1 = vld [vmem:[#allocation8 + $0x68] sm:$0xff]  ;;  %v1432_v2 = vld [vmem:[#allocation8 + $0x70] sm:$0xff]  ;;  %v2721_v5 = vpack.c.bf16 %v1427_v60, %v1426_v55  ;;  %v2729_v9 = vpack.c.bf16 %v1429_v63, %v1428_v61  ;;  %s3200_s22 = scalar_lea.sflag [#allocation7], %s353_s10  ;;  %s2271_s18 = scalar_lea.vmem %s3194_s23, 2048 }
 0x1b9   : > { %2065 = vmatprep.subr.bf16.mxu1 %v2064_v51  ;;  %v1433_v6 = vld [vmem:[#allocation8 + $0x78] sm:$0xff]  ;;  %v867_v7 = vld [vmem:[%s3256_s4] sm:$0x7]  ;;  %v868_v62 = vld [vmem:[%s3256_s4 + $0x4] sm:$0x7]  ;;  %v2753_v27 = vpack.c.bf16 %v1431_v1, %v1430_v0  ;;  %p2272_p0 = scmp.ne.s32.totalorder %s3194_s23, %s2271_s18  ;;  %p3295_p2 = scmp.ne.s32.totalorder %s3284_s27, 0 }
 0x1ba   : > { %v869_v10 = vld [vmem:[%s3256_s4 + $0x8] sm:$0x7]  ;;  %v870_v11 = vld [vmem:[#allocation3] sm:$0xff]  ;;  %v2734_v12 = vrot.slane %v867_v7, %v888_v56  ;;  %v2736_v14 = vrot.slane %v867_v7, %v940_v58  ;;  %v2738_v15 = vrot.slane %v867_v7, %v992_v59  ;;  %v2740_v18 = vrot.slane %v868_v62, %v888_v56  ;;  %v2759_v32 = vld [vmem:[#allocation3 + $0x30] sm:$0xff]  ;;  %s2384_s13 = smov [#allocation10]  }
 0x1bb   : > { %v922_v13 = vld [vmem:[#allocation3 + $0x1] sm:$0xff]  ;;  %v1027_v17 = vld [vmem:[#allocation3 + $0x18] sm:$0xff]  ;;  %v2742_v19 = vrot.slane %v868_v62, %v940_v58  ;;  %v2744_v20 = vrot.slane %v868_v62, %v992_v59  ;;  %v2746_v21 = vrot.slane %v869_v10, %v888_v56  ;;  %v2751_v26 = vrot.slane %v869_v10, %v940_v58  ;;  %v923_v37 = vld [vmem:[#allocation3 + $0x9] sm:$0xff]  ;;  %p2273_p10 = pnand %p2272_p0, %p3295_p2  ;;  %s2275_s15 = sshll.u32 %s2384_s13, 4  ;;  %s2276_s15 = int_to_ptr.vmem [resolvable:$false] %s2275_s15 }
 0x1bc   : > { %v974_v16 = vld [vmem:[#allocation3 + $0x2] sm:$0xff]  ;;  %2067 = vmatpush3.bf16.msra.mxu1 %v2064_v51  ;;  %v890_v22 = vmul.f32 %v2734_v12, %v870_v11  ;;  %v942_v23 = vmul.f32 %v2736_v14, %v922_v13  ;;  %v1079_v25 = vld [vmem:[#allocation3 + $0x19] sm:$0xff]  ;;  %v2755_v28 = vpack.c.bf16 %v1433_v6, %v1432_v2  ;;  %v1047_v29 = vmul.f32 %v2740_v18, %v1027_v17  ;;  %v975_v38 = vld [vmem:[#allocation3 + $0xa] sm:$0xff]  ;;  %s2277_s20 = scalar_lea.vmem %s2276_s15, 4096  ;;  %p2278_p1 = scmp.lt.s32.totalorder %s3194_s23, %s2276_s15 }
 0x1bd   : > { %v994_v24 = vmul.f32 %v2738_v15, %v974_v16  ;;  %2069 = vmatprep.subr.bf16.mxu1 %v2068_v3  ;;  %v1099_v30 = vmul.f32 %v2742_v19, %v1079_v25  ;;  %v1131_v31 = vld [vmem:[#allocation3 + $0x1a] sm:$0xff]  ;;  %v2762_v35 = vrot.slane %v869_v10, %v992_v59  ;;  %v871_v36 = vld [vmem:[#allocation3 + $0x8] sm:$0xff]  ;;  %v892_v39 = vmul.f32 %v1027_v17, %v2734_v12  ;;  %v2765_v40 = vld [vmem:[#allocation3 + $0x31] sm:$0xff]  ;;  %s3192_s25 = scalar_lea.hbm %s3294_s12, %s1811_s30  ;;  %p2274_p12 = pneg %p2273_p10 }
 0x1be   : > { %v958_v33 = vadd.f32 %v942_v23, %v890_v22  ;;  %v1151_v34 = vmul.f32 %v2744_v20, %v1131_v31  ;;  %v2767_v41 = vld [vmem:[#allocation3 + $0x32] sm:$0xff]  ;;  %v891_v42 = vmul.f32 %v2734_v12, %v871_v36  ;;  %v943_v43 = vmul.f32 %v2736_v14, %v923_v37  ;;  %v1028_v57 = vld [vmem:[#allocation3 + $0x20] sm:$0xff]  ;;  %v2805_v11 = vld [vmem:[#allocation3 + $0x48] sm:$0xff]  ;;  %p2279_p4 = scmp.lt.s32.totalorder %s2277_s20, %s2271_s18 }
 0x1bf   : > { %v995_v54 = vmul.f32 %v2738_v15, %v975_v38  ;;  %v944_v44 = vmul.f32 %v1079_v25, %v2736_v14  ;;  %v1204_v45 = vmul.f32 %v2746_v21, %v2759_v32  ;;  %v1256_v46 = vmul.f32 %v2751_v26, %v2765_v40  ;;  %v1080_v48 = vld [vmem:[#allocation3 + $0x21] sm:$0xff]  ;;  %v2785_v55 = vld [vmem:[#allocation3 + $0x38] sm:$0xff]  ;;  %v2810_v17 = vld [vmem:[#allocation3 + $0x49] sm:$0xff] }
 0x1c0   : > { %2071 = vmatpush3.bf16.msra.mxu1 %v2068_v3  ;;  %v1010_v8 = vadd.f32 %v994_v24, %v958_v33  ;;  %v2779_v47 = vmul.f32 %v2762_v35, %v2767_v41  ;;  %v1132_v49 = vld [vmem:[#allocation3 + $0x22] sm:$0xff]  ;;  %v959_v50 = vadd.f32 %v943_v43, %v891_v42  ;;  %v1048_v51 = vmul.f32 %v2740_v18, %v1028_v57  ;;  %v2789_v59 = vld [vmem:[#allocation3 + $0x39] sm:$0xff]  ;;  %v2828_v43 = vld [vmem:[#allocation3 + $0x50] sm:$0xff]  ;;  %p2280_p5 = por %p2279_p4, %p2278_p1 }
 0x1c1   : > { %2073 = vmatprep.subr.bf16.mxu1 %v2719_v4  ;;  %v1100_v52 = vmul.f32 %v2742_v19, %v1080_v48  ;;  %v1152_v53 = vmul.f32 %v2744_v20, %v1132_v49  ;;  %v1205_v58 = vmul.f32 %v2746_v21, %v2785_v55  ;;  %v2791_v60 = vld [vmem:[#allocation3 + $0x3a] sm:$0xff]  ;;  %v960_v61 = vadd.f32 %v944_v44, %v892_v39 }
 0x1c2   : > { %v1063_v56 = vadd.f32 %v1047_v29, %v1010_v8  ;;  %v996_v63 = vmul.f32 %v1131_v31, %v2738_v15  ;;  %v1011_v0 = vadd.f32 %v995_v54, %v959_v50  ;;  %v1257_v1 = vmul.f32 %v2751_v26, %v2789_v59  ;;  %v2816_v29 = vld [vmem:[#allocation3 + $0x4a] sm:$0xff]  ;;  %p2281_p6 = pnand %p2280_p5, %p2274_p12 }
 0x1c3   : > { %v1309_v2 = vmul.f32 %v2762_v35, %v2791_v60  ;;  %v1049_v3 = vmul.f32 %v2759_v32, %v2740_v18  ;;  %v1101_v62 = vmul.f32 %v2765_v40, %v2742_v19  ;;  %v1153_v10 = vmul.f32 %v2767_v41, %v2744_v20 }
 0x1c4   : > { %2075 = vmatpush3.bf16.msra.mxu1 %v2719_v4  ;;  %v1115_v6 = vadd.f32 %v1099_v30, %v1063_v56  ;;  %v1012_v7 = vadd.f32 %v996_v63, %v960_v61  ;;  %v1064_v13 = vadd.f32 %v1048_v51, %v1011_v0  ;;  %v1206_v16 = vmul.f32 %v2746_v21, %v2805_v11 }
 0x1c5   : > { %2077 = vmatprep.subr.bf16.mxu1 %v2721_v5  ;;  %v893_v4 = vmul.f32 %v1028_v57, %v2734_v12  ;;  %v945_v22 = vmul.f32 %v1080_v48, %v2736_v14  ;;  %v1258_v25 = vmul.f32 %v2751_v26, %v2810_v17  ;;  %v997_v30 = vmul.f32 %v1132_v49, %v2738_v15  ;;  %v2835_v48 = vld [vmem:[#allocation3 + $0x51] sm:$0xff] }
 0x1c6   : > { %v1167_v23 = vadd.f32 %v1151_v34, %v1115_v6  ;;  %v1065_v24 = vadd.f32 %v1049_v3, %v1012_v7  ;;  %v1116_v31 = vadd.f32 %v1100_v52, %v1064_v13  ;;  %v1310_v33 = vmul.f32 %v2762_v35, %v2816_v29  ;;  %v2837_v49 = vld [vmem:[#allocation3 + $0x52] sm:$0xff]  ;;  %v2846_v52 = vld [vmem:[%s3257_s5] ss:$0 sm:$0xff] }
 0x1c7   : > { %v961_v36 = vadd.f32 %v945_v22, %v893_v4  ;;  %v1050_v37 = vmul.f32 %v2785_v55, %v2740_v18  ;;  %v1102_v39 = vmul.f32 %v2789_v59, %v2742_v19  ;;  %v1154_v42 = vmul.f32 %v2791_v60, %v2744_v20 }
 0x1c8   : > { %2079 = vmatpush3.bf16.msra.mxu1 %v2721_v5  ;;  %v1220_v38 = vadd.f32 %v1204_v45, %v1167_v23  ;;  %v1117_v34 = vadd.f32 %v1101_v62, %v1065_v24  ;;  %v1168_v54 = vadd.f32 %v1152_v53, %v1116_v31  ;;  %v1207_v44 = vmul.f32 %v2746_v21, %v2828_v43 }
 0x1c9   : > { %2081 = vmatprep.subr.bf16.mxu1 %v2729_v9  ;;  %v1013_v57 = vadd.f32 %v997_v30, %v961_v36  ;;  %v894_v5 = vmul.f32 %v2759_v32, %v2734_v12  ;;  %v946_v50 = vmul.f32 %v2765_v40, %v2736_v14  ;;  %v998_v51 = vmul.f32 %v2767_v41, %v2738_v15  ;;  %v2881_v36 = vld [vmem:[#allocation3 + $0x61] sm:$0xff] }
 0x1ca   : > { %v1272_v8 = vadd.f32 %v1256_v46, %v1220_v38  ;;  %v1169_v45 = vadd.f32 %v1153_v10, %v1117_v34  ;;  %v1221_v53 = vadd.f32 %v1205_v58, %v1168_v54  ;;  %v1259_v32 = vmul.f32 %v2751_v26, %v2835_v48  ;;  %v2860_v58 = vld [vmem:[%s3258_s6] ss:$0 sm:$0xff] }
 0x1cb   : > { %v1066_v56 = vadd.f32 %v1050_v37, %v1013_v57  ;;  %v1311_v46 = vmul.f32 %v2762_v35, %v2837_v49  ;;  %v962_v63 = vadd.f32 %v946_v50, %v894_v5  ;;  %v1051_v41 = vmul.f32 %v2805_v11, %v2740_v18 }
 0x1cc   : > { %2083 = vmatpush3.bf16.msra.mxu1 %v2729_v9  ;;  %v1324_v40 = vadd.f32 %v2779_v47, %v1272_v8  ;;  %v1222_v61 = vadd.f32 %v1206_v16, %v1169_v45  ;;  %v1273_v0 = vadd.f32 %v1257_v1, %v1221_v53  ;;  %v1103_v6 = vmul.f32 %v2810_v17, %v2742_v19  ;;  %v2866_v47 = vld [vmem:[#allocation3 + $0x60] sm:$0xff] }
 0x1cd   : > { %2085 = vmatprep.subr.bf16.mxu1 %v2753_v27  ;;  %v1118_v3 = vadd.f32 %v1102_v39, %v1066_v56  ;;  %v1155_v9 = vmul.f32 %v2816_v29, %v2744_v20  ;;  %v1014_v10 = vadd.f32 %v998_v51, %v962_v63  ;;  %v1208_v13 = vmul.f32 %v2746_v21, %v2866_v47  ;;  %v2889_v39 = vld [vmem:[#allocation3 + $0x62] sm:$0xff] }
 0x1ce   : > { %v1347_v7 = vmul.f32 %v2846_v52, %v1324_v40  ;;  %v1274_v62 = vadd.f32 %v1258_v25, %v1222_v61  ;;  %v1325_v16 = vadd.f32 %v1309_v2, %v1273_v0  ;;  %v895_v1 = vmul.f32 %v2785_v55, %v2734_v12  ;;  %v2899_v56 = vld [vmem:[#allocation3 + $0x68] sm:$0xff] }
 0x1cf   : > { %v1170_v4 = vadd.f32 %v1154_v42, %v1118_v3  ;;  %v947_v22 = vmul.f32 %v2789_v59, %v2736_v14  ;;  %v1067_v30 = vadd.f32 %v1051_v41, %v1014_v10  ;;  %v999_v25 = vmul.f32 %v2791_v60, %v2738_v15 }
 0x1d0   : > { %2087 = vmatpush3.bf16.msra.mxu1 %v2753_v27  ;;  %v1370_v23 = vadd.f32 %v2860_v58, %v1347_v7  ;;  %v1326_v24 = vadd.f32 %v1310_v33, %v1274_v62  ;;  %v1348_v2 = vmul.f32 %v2846_v52, %v1325_v16  ;;  %v1052_v59 = vmul.f32 %v2828_v43, %v2740_v18 }
 0x1d1   : > { %2089 = vmatprep.subr.bf16.mxu1 %v2755_v28  ;;  %v1223_v31 = vadd.f32 %v1207_v44, %v1170_v4  ;;  %v963_v55 = vadd.f32 %v947_v22, %v895_v1  ;;  %v1119_v38 = vadd.f32 %v1103_v6, %v1067_v30  ;;  %v1260_v33 = vmul.f32 %v2751_v26, %v2881_v36 }
 0x1d2   : > { %v1386_v37 = vmax.f32 %v1370_v23, 0.0  ;;  %v1349_v27 = vmul.f32 %v2846_v52, %v1326_v24  ;;  %v1371_v60 = vadd.f32 %v2860_v58, %v1348_v2  ;;  %v1104_v54 = vmul.f32 %v2835_v48, %v2742_v19  ;;  %v2926_v2 = vld [vmem:[#allocation3 + $0x78] sm:$0xff] }
 0x1d3   : > { %v1275_v34 = vadd.f32 %v1259_v32, %v1223_v31  ;;  %v1015_v42 = vadd.f32 %v999_v25, %v963_v55  ;;  %v1171_v5 = vadd.f32 %v1155_v9, %v1119_v38  ;;  %v1312_v8 = vmul.f32 %v2762_v35, %v2889_v39 }
 0x1d4   : > { %2091 = vmatpush3.bf16.msra.mxu1 %v2755_v28  ;;  %v1402_v57 = vmin.f32 %v1386_v37, 6.0  ;;  %v1372_v44 = vadd.f32 %v2860_v58, %v1349_v27  ;;  %v1387_v45 = vmax.f32 %v1371_v60, 0.0  ;;  %v1156_v53 = vmul.f32 %v2837_v49, %v2744_v20  ;;  %v2936_v60 = vld [vmem:[#allocation3 + $0x79] sm:$0xff] }
 0x1d5   : > { %v1327_v50 = vadd.f32 %v1311_v46, %v1275_v34  ;;  %v1068_v51 = vadd.f32 %v1052_v59, %v1015_v42  ;;  %v1224_v40 = vadd.f32 %v1208_v13, %v1171_v5  ;;  %v1209_v28 = vmul.f32 %v2746_v21, %v2899_v56  ;;  %v2906_v46 = vld [vmem:[#allocation3 + $0x69] sm:$0xff] }
 0x1d6   : > { %2004 = vmatprep.mubr.f32.mxu1 %v1402_v57  ;;  %v1388_v32 = vmax.f32 %v1372_v44, 0.0  ;;  %v896_v61 = vmul.f32 %v2805_v11, %v2734_v12  ;;  %v1403_v63 = vmin.f32 %v1387_v45, 6.0  ;;  %v948_v3 = vmul.f32 %v2810_v17, %v2736_v14  ;;  %v2915_v13 = vld [vmem:[#allocation3 + $0x6a] sm:$0xff] }
 0x1d7   : > { %v1350_v41 = vmul.f32 %v2846_v52, %v1327_v50  ;;  %v1120_v0 = vadd.f32 %v1104_v54, %v1068_v51  ;;  %v1276_v9 = vadd.f32 %v1260_v33, %v1224_v40  ;;  %v1261_v7 = vmul.f32 %v2751_v26, %v2906_v46  ;;  %v2954_v40 = vld [vmem:[#allocation3 + $0x80] sm:$0xff] }
 0x1d8   : > { %v1404_v6 = vmin.f32 %v1388_v32, 6.0  ;;  %v1000_v62 = vmul.f32 %v2816_v29, %v2738_v15  ;;  %2005 = vmatmul.mubr.f32.vlgmr.msra.gmra.mrb[0].mxu1 %v1403_v63  ;;  %v964_v16 = vadd.f32 %v948_v3, %v896_v61  ;;  %v1053_v4 = vmul.f32 %v2866_v47, %v2740_v18 }
 0x1d9   : > { %v1373_v11 = vadd.f32 %v2860_v58, %v1350_v41  ;;  %v1172_v10 = vadd.f32 %v1156_v53, %v1120_v0  ;;  %v1328_v17 = vadd.f32 %v1312_v8, %v1276_v9  ;;  %v1313_v1 = vmul.f32 %v2762_v35, %v2915_v13 }
 0x1da   : > { %2007 = vmatprep.mubr.f32.mxu1 %v1404_v6  ;;  %v1105_v22 = vmul.f32 %v2881_v36, %v2742_v19  ;;  %v1016_v24 = vadd.f32 %v1000_v62, %v964_v16  ;;  %v1157_v30 = vmul.f32 %v2889_v39, %v2744_v20  ;;  %v897_v31 = vmul.f32 %v2828_v43, %v2734_v12  ;;  %v2941_v43 = vld [vmem:[#allocation3 + $0x7a] sm:$0xff] }
 0x1db   : > { %v1389_v23 = vmax.f32 %v1373_v11, 0.0  ;;  %v1225_v29 = vadd.f32 %v1209_v28, %v1172_v10  ;;  %v1351_v25 = vmul.f32 %v2846_v52, %v1328_v17  ;;  %v949_v55 = vmul.f32 %v2835_v48, %v2736_v14  ;;  %v2956_v28 = vld [vmem:[#allocation3 + $0x81] sm:$0xff] }
 0x1dc   : > { %v1001_v59 = vmul.f32 %v2837_v49, %v2738_v15  ;;  %v1069_v38 = vadd.f32 %v1053_v4, %v1016_v24  ;;  %v1210_v33 = vmul.f32 %v2746_v21, %v2926_v2  ;;  %v1262_v42 = vmul.f32 %v2751_v26, %v2936_v60 }
 0x1dd   : > { %v1405_v37 = vmin.f32 %v1389_v23, 6.0  ;;  %v1277_v27 = vadd.f32 %v1261_v7, %v1225_v29  ;;  %v1374_v34 = vadd.f32 %v2860_v58, %v1351_v25  ;;  %v965_v54 = vadd.f32 %v949_v55, %v897_v31  ;;  %v2967_v7 = vld [vmem:[#allocation3 + $0x82] sm:$0xff] }
 0x1de   : > { %v1054_v48 = vmul.f32 %v2899_v56, %v2740_v18  ;;  %v1121_v57 = vadd.f32 %v1105_v22, %v1069_v38  ;;  %v1314_v44 = vmul.f32 %v2762_v35, %v2941_v43  ;;  %v1106_v5 = vmul.f32 %v2906_v46, %v2742_v19  ;;  %v2977_v22 = vld [vmem:[#allocation3 + $0x90] sm:$0xff] }
 0x1df   : > { %2008 = vmatmul.mubr.f32.gmra.mrb[2].mxu1 %v1405_v37  ;;  %v1329_v49 = vadd.f32 %v1313_v1, %v1277_v27  ;;  %v1390_v8 = vmax.f32 %v1374_v34, 0.0  ;;  %v1017_v45 = vadd.f32 %v1001_v59, %v965_v54  ;;  %v1158_v50 = vmul.f32 %v2915_v13, %v2744_v20  ;;  %v2991_v38 = vld [vmem:[#allocation3 + $0x92] sm:$0xff] }
 0x1e0   : > { %v898_v51 = vmul.f32 %v2866_v47, %v2734_v12  ;;  %v1173_v32 = vadd.f32 %v1157_v30, %v1121_v57  ;;  %v950_v61 = vmul.f32 %v2881_v36, %v2736_v14  ;;  %v1002_v63 = vmul.f32 %v2889_v39, %v2738_v15  ;;  %v2983_v30 = vld [vmem:[#allocation3 + $0x91] sm:$0xff] }
 0x1e1   : > { %v1352_v53 = vmul.f32 %v2846_v52, %v1329_v49  ;;  %v1406_v41 = vmin.f32 %v1390_v8, 6.0  ;;  %v1070_v0 = vadd.f32 %v1054_v48, %v1017_v45  ;;  %v1211_v3 = vmul.f32 %v2746_v21, %v2954_v40 }
 0x1e2   : > { %v1263_v47 = vmul.f32 %v2751_v26, %v2956_v28  ;;  %v1226_v9 = vadd.f32 %v1210_v33, %v1173_v32  ;;  %v966_v62 = vadd.f32 %v950_v61, %v898_v51  ;;  %v1055_v36 = vmul.f32 %v2926_v2, %v2740_v18 }
 0x1e3   : > { %v1375_v6 = vadd.f32 %v2860_v58, %v1352_v53  ;;  %2010 = vmatprep.mubr.f32.mxu1 %v1406_v41  ;;  %v1122_v11 = vadd.f32 %v1106_v5, %v1070_v0  ;;  %v1315_v39 = vmul.f32 %v2762_v35, %v2967_v7  ;;  %v1107_v10 = vmul.f32 %v2936_v60, %v2742_v19  ;;  %v3015_v41 = vld [vmem:[#allocation3 + $0x9a] sm:$0xff] }
 0x1e4   : > { %v1159_v16 = vmul.f32 %v2941_v43, %v2744_v20  ;;  %v1278_v17 = vadd.f32 %v1262_v42, %v1226_v9  ;;  %v1018_v1 = vadd.f32 %v1002_v63, %v966_v62  ;;  %v899_v23 = vmul.f32 %v2899_v56, %v2734_v12  ;;  %v3013_v63 = vld [vmem:[#allocation3 + $0x99] sm:$0xff] }
 0x1e5   : > { %v1391_v4 = vmax.f32 %v1375_v6, 0.0  ;;  %v1174_v29 = vadd.f32 %v1158_v50, %v1122_v11  ;;  %v1212_v24 = vmul.f32 %v2746_v21, %v2977_v22  ;;  %v951_v25 = vmul.f32 %v2906_v46, %v2736_v14 }
 0x1e6   : > { %v1003_v31 = vmul.f32 %v2915_v13, %v2738_v15  ;;  %v1330_v59 = vadd.f32 %v1314_v44, %v1278_v17  ;;  %v1071_v37 = vadd.f32 %v1055_v36, %v1018_v1  ;;  %v1264_v27 = vmul.f32 %v2751_v26, %v2983_v30  ;;  %v3002_v44 = vld [vmem:[#allocation3 + $0x98] sm:$0xff] }
 0x1e7   : > { %v1407_v55 = vmin.f32 %v1391_v4, 6.0  ;;  %v1227_v56 = vadd.f32 %v1211_v3, %v1174_v29  ;;  %v1316_v33 = vmul.f32 %v2762_v35, %v2991_v38  ;;  %v967_v34 = vadd.f32 %v951_v25, %v899_v23  ;;  %v3031_v23 = vld [vmem:[#allocation3 + $0xa8] sm:$0xff] }
 0x1e8   : > { %v1056_v42 = vmul.f32 %v2954_v40, %v2740_v18  ;;  %v1353_v46 = vmul.f32 %v2846_v52, %v1330_v59  ;;  %v1123_v13 = vadd.f32 %v1107_v10, %v1071_v37  ;;  %v1108_v54 = vmul.f32 %v2956_v28, %v2742_v19 }
 0x1e9   : > { %2011 = vmatmul.mubr.f32.gmra.mrb[4].mxu1 %v1407_v55  ;;  %v1160_v48 = vmul.f32 %v2967_v7, %v2744_v20  ;;  %v1279_v49 = vadd.f32 %v1263_v47, %v1227_v56  ;;  %v1019_v57 = vadd.f32 %v1003_v31, %v967_v34  ;;  %v900_v5 = vmul.f32 %v2926_v2, %v2734_v12  ;;  %v3043_v56 = vld [vmem:[#allocation3 + $0xaa] sm:$0xff] }
 0x1ea   : > { %v952_v8 = vmul.f32 %v2936_v60, %v2736_v14  ;;  %v1376_v45 = vadd.f32 %v2860_v58, %v1353_v46  ;;  %v1175_v50 = vadd.f32 %v1159_v16, %v1123_v13  ;;  %v1213_v51 = vmul.f32 %v2746_v21, %v3002_v44 }
 0x1eb   : > { %v1004_v53 = vmul.f32 %v2941_v43, %v2738_v15  ;;  %v1331_v32 = vadd.f32 %v1315_v39, %v1279_v49  ;;  %v1072_v61 = vadd.f32 %v1056_v42, %v1019_v57  ;;  %v1057_v2 = vmul.f32 %v2977_v22, %v2740_v18 }
 0x1ec   : > { %v968_v0 = vadd.f32 %v952_v8, %v900_v5  ;;  %v1392_v60 = vmax.f32 %v1376_v45, 0.0  ;;  %v1228_v3 = vadd.f32 %v1212_v24, %v1175_v50  ;;  %v1265_v47 = vmul.f32 %v2751_v26, %v3013_v63 }
 0x1ed   : > { %v1317_v6 = vmul.f32 %v2762_v35, %v3015_v41  ;;  %v1354_v43 = vmul.f32 %v2846_v52, %v1331_v32  ;;  %v1124_v9 = vadd.f32 %v1108_v54, %v1072_v61  ;;  %v1109_v36 = vmul.f32 %v2983_v30, %v2742_v19  ;;  %v3061_v61 = vld [vmem:[#allocation3 + $0xb0] sm:$0xff] }
 0x1ee   : > { %v1020_v62 = vadd.f32 %v1004_v53, %v968_v0  ;;  %v1408_v11 = vmin.f32 %v1392_v60, 6.0  ;;  %v1280_v39 = vadd.f32 %v1264_v27, %v1228_v3  ;;  %v1161_v10 = vmul.f32 %v2991_v38, %v2744_v20  ;;  %v3041_v27 = vld [vmem:[#allocation3 + $0xa9] sm:$0xff] }
 0x1ef   : > { %v901_v16 = vmul.f32 %v2954_v40, %v2734_v12  ;;  %v1377_v4 = vadd.f32 %v2860_v58, %v1354_v43  ;;  %v1176_v17 = vadd.f32 %v1160_v48, %v1124_v9  ;;  %v953_v29 = vmul.f32 %v2956_v28, %v2736_v14 }
 0x1f0   : > { %v1073_v1 = vadd.f32 %v1057_v2, %v1020_v62  ;;  %2013 = vmatprep.mubr.f32.mxu1 %v1408_v11  ;;  %v1332_v24 = vadd.f32 %v1316_v33, %v1280_v39  ;;  %v1214_v25 = vmul.f32 %v2746_v21, %v3031_v23  ;;  %v1005_v31 = vmul.f32 %v2967_v7, %v2738_v15 }
 0x1f1   : > { %v1058_v40 = vmul.f32 %v3002_v44, %v2740_v18  ;;  %v1393_v55 = vmax.f32 %v1377_v4, 0.0  ;;  %v1229_v59 = vadd.f32 %v1213_v51, %v1176_v17  ;;  %v969_v34 = vadd.f32 %v953_v29, %v901_v16 }
 0x1f2   : > { %v1125_v37 = vadd.f32 %v1109_v36, %v1073_v1  ;;  %v1355_v28 = vmul.f32 %v2846_v52, %v1332_v24  ;;  %v1266_v33 = vmul.f32 %v2751_v26, %v3041_v27  ;;  %v1318_v42 = vmul.f32 %v2762_v35, %v3043_v56 }
 0x1f3   : > { %v1110_v7 = vmul.f32 %v3013_v63, %v2742_v19  ;;  %v1409_v46 = vmin.f32 %v1393_v55, 6.0  ;;  %v1281_v13 = vadd.f32 %v1265_v47, %v1229_v59  ;;  %v1021_v48 = vadd.f32 %v1005_v31, %v969_v34  ;;  %v3068_v47 = vld [vmem:[#allocation3 + $0xb1] sm:$0xff] }
 0x1f4   : > { %v1177_v54 = vadd.f32 %v1161_v10, %v1125_v37  ;;  %v1378_v49 = vadd.f32 %v2860_v58, %v1355_v28  ;;  %v1162_v57 = vmul.f32 %v3015_v41, %v2744_v20  ;;  %v902_v5 = vmul.f32 %v2977_v22, %v2734_v12  ;;  %v1299_v10 = vld [vmem:[#allocation3 + $0xb2] sm:$0xff]  ;;  %v1248_v37 = vld [vmem:[#allocation3 + $0xc1] sm:$0xff] }
 0x1f5   : > { %v954_v8 = vmul.f32 %v2983_v30, %v2736_v14  ;;  %2014 = vmatmul.mubr.f32.gmra.mrb[6].mxu1 %v1409_v46  ;;  %v1333_v45 = vadd.f32 %v1317_v6, %v1281_v13  ;;  %v1074_v51 = vadd.f32 %v1058_v40, %v1021_v48  ;;  %v1006_v53 = vmul.f32 %v2991_v38, %v2738_v15  ;;  %v1196_v40 = vld [vmem:[#allocation3 + $0xc0] sm:$0xff] }
 0x1f6   : > { %v1230_v50 = vadd.f32 %v1214_v25, %v1177_v54  ;;  %v1394_v32 = vmax.f32 %v1378_v49, 0.0  ;;  %v1059_v2 = vmul.f32 %v3031_v23, %v2740_v18  ;;  %v1215_v30 = vmul.f32 %v2746_v21, %v3061_v61 }
 0x1f7   : > { %v970_v0 = vadd.f32 %v954_v8, %v902_v5  ;;  %v1356_v60 = vmul.f32 %v2846_v52, %v1333_v45  ;;  %v1126_v3 = vadd.f32 %v1110_v7, %v1074_v51  ;;  %v1267_v38 = vmul.f32 %v2751_v26, %v3068_v47 }
 0x1f8   : > { %v1282_v22 = vadd.f32 %v1266_v33, %v1230_v50  ;;  %v1410_v6 = vmin.f32 %v1394_v32, 6.0  ;;  %v1111_v9 = vmul.f32 %v3041_v27, %v2742_v19  ;;  %v1163_v39 = vmul.f32 %v3043_v56, %v2744_v20 }
 0x1f9   : > { %v1022_v43 = vadd.f32 %v1006_v53, %v970_v0  ;;  %v1379_v62 = vadd.f32 %v2860_v58, %v1356_v60  ;;  %v1178_v11 = vadd.f32 %v1162_v57, %v1126_v3  ;;  %v903_v4 = vmul.f32 %v3002_v44, %v2734_v12  ;;  %v1197_v0 = vld [vmem:[#allocation3 + $0xc8] sm:$0xff] }
 0x1fa   : > { %v1334_v36 = vadd.f32 %v1318_v42, %v1282_v22  ;;  %2016 = vmatprep.mubr.f32.mxu1 %v1410_v6  ;;  %v955_v17 = vmul.f32 %v3013_v63, %v2736_v14  ;;  %v1007_v1 = vmul.f32 %v3015_v41, %v2738_v15  ;;  %v1319_v31 = vmul.f32 %v2762_v35, %v1299_v10  ;;  %v1300_v42 = vld [vmem:[#allocation3 + $0xc2] sm:$0xff]  ;;  %v1301_v6 = vld [vmem:[#allocation3 + $0xca] sm:$0xff] }
 0x1fb   : > { %v1075_v16 = vadd.f32 %v1059_v2, %v1022_v43  ;;  %v1395_v29 = vmax.f32 %v1379_v62, 0.0  ;;  %v1231_v25 = vadd.f32 %v1215_v30, %v1178_v11  ;;  %v1216_v59 = vmul.f32 %v2746_v21, %v1196_v40  ;;  %v1249_v2 = vld [vmem:[#allocation3 + $0xc9] sm:$0xff]  ;;  %v1198_v11 = vld [vmem:[#allocation3 + $0xd8] sm:$0xff] }
 0x1fc   : > { %v1357_v24 = vmul.f32 %v2846_v52, %v1334_v36  ;;  %v971_v34 = vadd.f32 %v955_v17, %v903_v4  ;;  %v1060_v44 = vmul.f32 %v3061_v61, %v2740_v18  ;;  %v1268_v41 = vmul.f32 %v2751_v26, %v1248_v37 }
 0x1fd   : > { %v1127_v55 = vadd.f32 %v1111_v9, %v1075_v16  ;;  %v1411_v28 = vmin.f32 %v1395_v29, 6.0  ;;  %v1283_v33 = vadd.f32 %v1267_v38, %v1231_v25  ;;  %v1320_v46 = vmul.f32 %v2762_v35, %v1300_v42 }
 0x1fe   : > { %v1380_v63 = vadd.f32 %v2860_v58, %v1357_v24  ;;  %v1023_v13 = vadd.f32 %v1007_v1, %v971_v34  ;;  %v1112_v54 = vmul.f32 %v3068_v47, %v2742_v19  ;;  %v904_v57 = vmul.f32 %v3031_v23, %v2734_v12 }
 0x1ff   : > { %v1179_v7 = vadd.f32 %v1163_v39, %v1127_v55  ;;  %2017 = vmatmul.mubr.f32.gmra.mrb[8].mxu1 %v1411_v28  ;;  %v1335_v49 = vadd.f32 %v1319_v31, %v1283_v33  ;;  %v956_v5 = vmul.f32 %v3041_v27, %v2736_v14  ;;  %v1164_v50 = vmul.f32 %v1299_v10, %v2744_v20  ;;  %v1250_v31 = vld [vmem:[#allocation3 + $0xd9] sm:$0xff] }
 0x200   : > { %v1396_v48 = vmax.f32 %v1380_v63, 0.0  ;;  %v1076_v45 = vadd.f32 %v1060_v44, %v1023_v13  ;;  %v1008_v51 = vmul.f32 %v3043_v56, %v2738_v15  ;;  %v1061_v22 = vmul.f32 %v1196_v40, %v2740_v18  ;;  %v1199_v28 = vld [vmem:[#allocation3 + $0xe0] sm:$0xff] }
 0x201   : > { %v1232_v8 = vadd.f32 %v1216_v59, %v1179_v7  ;;  %v1358_v32 = vmul.f32 %v2846_v52, %v1335_v49  ;;  %v972_v60 = vadd.f32 %v956_v5, %v904_v57  ;;  %v1217_v30 = vmul.f32 %v2746_v21, %v1197_v0  ;;  %v1303_v57 = vld [vmem:[#allocation3 + $0xe2] sm:$0xff] }
 0x202   : > { %v1412_v53 = vmin.f32 %v1396_v48, 6.0  ;;  %v1128_v23 = vadd.f32 %v1112_v54, %v1076_v45  ;;  %v1269_v27 = vmul.f32 %v2751_v26, %v1249_v2  ;;  %v1321_v56 = vmul.f32 %v2762_v35, %v1301_v6 }
 0x203   : > { %v1284_v3 = vadd.f32 %v1268_v41, %v1232_v8  ;;  %v1381_v38 = vadd.f32 %v2860_v58, %v1358_v32  ;;  %v1024_v43 = vadd.f32 %v1008_v51, %v972_v60  ;;  %v1113_v9 = vmul.f32 %v1248_v37, %v2742_v19 }
 0x204   : > { %2019 = vmatprep.mubr.f32.mxu1 %v1412_v53  ;;  %v1180_v36 = vadd.f32 %v1164_v50, %v1128_v23  ;;  %v905_v39 = vmul.f32 %v3061_v61, %v2734_v12  ;;  %v957_v16 = vmul.f32 %v3068_v47, %v2736_v14  ;;  %v1165_v1 = vmul.f32 %v1300_v42, %v2744_v20  ;;  %v1302_v47 = vld [vmem:[#allocation3 + $0xda] sm:$0xff] }
 0x205   : > { %v1336_v62 = vadd.f32 %v1320_v46, %v1284_v3  ;;  %v1397_v4 = vmax.f32 %v1381_v38, 0.0  ;;  %v1077_v17 = vadd.f32 %v1061_v22, %v1024_v43  ;;  %v1009_v29 = vmul.f32 %v1299_v10, %v2738_v15  ;;  %v1251_v46 = vld [vmem:[#allocation3 + $0xe1] sm:$0xff]  ;;  %v3138_v38 = vld [vmem:[%s3261_s9] ss:$0 sm:$0xff] }
 0x206   : > { %v1233_v25 = vadd.f32 %v1217_v30, %v1180_v36  ;;  %v973_v40 = vadd.f32 %v957_v16, %v905_v39  ;;  %v1062_v55 = vmul.f32 %v1197_v0, %v2740_v18  ;;  %v1218_v12 = vmul.f32 %v2746_v21, %v1198_v11 }
 0x207   : > { %v1359_v24 = vmul.f32 %v2846_v52, %v1336_v62  ;;  %v1413_v59 = vmin.f32 %v1397_v4, 6.0  ;;  %v1129_v37 = vadd.f32 %v1113_v9, %v1077_v17  ;;  %v1114_v44 = vmul.f32 %v1249_v2, %v2742_v19  ;;  %v1626_v62 = vld [vmem:[#allocation2 + $0x19] sm:$0xff] }
 0x208   : > { %v1285_v14 = vadd.f32 %v1269_v27, %v1233_v25  ;;  %v1025_v34 = vadd.f32 %v1009_v29, %v973_v40  ;;  %v1270_v10 = vmul.f32 %v2751_v26, %v1250_v31  ;;  %v1166_v18 = vmul.f32 %v1301_v6, %v2744_v20  ;;  %v1628_v25 = vld [vmem:[#allocation2 + $0x31] sm:$0xff] }
 0x209   : > { %v1382_v61 = vadd.f32 %v2860_v58, %v1359_v24  ;;  %2020 = vmatmul.mubr.f32.gmra.mrb[10].mxu1 %v1413_v59  ;;  %v1181_v15 = vadd.f32 %v1165_v1, %v1129_v37  ;;  %v1322_v7 = vmul.f32 %v2762_v35, %v1302_v47  ;;  %v1219_v19 = vmul.f32 %v2746_v21, %v1199_v28  ;;  %v1629_v1 = vld [vmem:[#allocation2 + $0x39] sm:$0xff] }
 0x20a   : > { %v1337_v33 = vadd.f32 %v1321_v56, %v1285_v14  ;;  %v1078_v41 = vadd.f32 %v1062_v55, %v1025_v34  ;;  %v1271_v45 = vmul.f32 %v2751_v26, %v1251_v46  ;;  %v1323_v53 = vmul.f32 %v2762_v35, %v1303_v57  ;;  %v3133_v35 = vld [vmem:[%s3260_s8] ss:$0 sm:$0xff]  ;;  %v1627_v56 = vld [vmem:[#allocation2 + $0x21] sm:$0xff]  ;;  %v1630_v34 = vld [vmem:[#allocation2 + $0x49] sm:$0xff] }
 0x20b   : > { %v1398_v63 = vmax.f32 %v1382_v61, 0.0  ;;  %v1234_v42 = vadd.f32 %v1218_v12, %v1181_v15  ;;  %v1631_v61 = vld [vmem:[#allocation2 + $0x51] sm:$0xff]  ;;  %v1635_v57 = vld [vmem:[#allocation2 + $0x81] sm:$0xff] }
 0x20c   : > { %v1360_v54 = vmul.f32 %v2846_v52, %v1337_v33  ;;  %v1130_v48 = vadd.f32 %v1114_v44, %v1078_v41  ;;  %v1633_v41 = vld [vmem:[#allocation2 + $0x69] sm:$0xff] }
 0x20d   : > { %v1414_v13 = vmin.f32 %v1398_v63, 6.0  ;;  %v1286_v49 = vadd.f32 %v1270_v10, %v1234_v42 }
 0x20e   : > { %v1383_v5 = vadd.f32 %v2860_v58, %v1360_v54  ;;  %v1182_v8 = vadd.f32 %v1166_v18, %v1130_v48 }
 0x20f   : > { %2022 = vmatprep.mubr.f32.mxu1 %v1414_v13  ;;  %v1338_v50 = vadd.f32 %v1322_v7, %v1286_v49  ;;  %v1632_v7 = vld [vmem:[#allocation2 + $0x61] sm:$0xff] }
 0x210   : > { %v1399_v20 = vmax.f32 %v1383_v5, 0.0  ;;  %v1235_v51 = vadd.f32 %v1219_v19, %v1182_v8 }
 0x211   : > { %v1361_v32 = vmul.f32 %v2846_v52, %v1338_v50 }
 0x212   : > { %v1415_v0 = vmin.f32 %v1399_v20, 6.0  ;;  %v1287_v2 = vadd.f32 %v1271_v45, %v1235_v51  ;;  %v1634_v45 = vld [vmem:[#allocation2 + $0x79] sm:$0xff] }
 0x213   : > { %v1384_v60 = vadd.f32 %v2860_v58, %v1361_v32 }
 0x214   : > { %2023 = vmatmul.mubr.f32.gmra.mrb[12].mxu1 %v1415_v0  ;;  %v1339_v21 = vadd.f32 %v1323_v53, %v1287_v2  ;;  %v1637_v2 = vld [vmem:[#allocation2 + $0x99] sm:$0xff] }
 0x215   : > { %v1400_v22 = vmax.f32 %v1384_v60, 0.0 }
 0x216   : > { %v1362_v3 = vmul.f32 %v2846_v52, %v1339_v21 }
 0x217   : > { %v1416_v23 = vmin.f32 %v1400_v22, 6.0  ;;  %v1636_v22 = vld [vmem:[#allocation2 + $0x91] sm:$0xff] }
 0x218   : > { %v1385_v30 = vadd.f32 %v2860_v58, %v1362_v3 }
 0x219   : > { %2025 = vmatprep.mubr.f32.mxu1 %v1416_v23 }
 0x21a   : > { %v1401_v26 = vmax.f32 %v1385_v30, 0.0 }
 0x21c   : > { %v1417_v27 = vmin.f32 %v1401_v26, 6.0 }
 0x21e   : > { %2026 = vmatmul.mubr.f32.gmra.mrb[14].mxu1 %v1417_v27 }
 0x2ab   : > { %v2006_v6 = vpop.f32.mrb[0].mxu1 }
 0x2ac   : > { %v1587_v52 = vmul.f32 %v2006_v6, %v3133_v35  ;;  %v1500_v58 = vpop.f32.mrb[1].mxu1 }
 0x2ad   : > { %v1586_v43 = vmul.f32 %v3133_v35, %v1500_v58 }
 0x2ae   : > { %v1610_v9 = vadd.f32 %v3138_v38, %v1587_v52  ;;  %v1639_v52 = vld [vmem:[#allocation2 + $0xb1] sm:$0xff] }
 0x2af   : > { %v1609_v36 = vadd.f32 %v3138_v38, %v1586_v43  ;;  %v1638_v43 = vld [vmem:[#allocation2 + $0xa9] sm:$0xff] }
 0x2b0   : > { %v1643_v11 = vadd.f32 %v1627_v56, %v1610_v9 }
 0x2b1   : > { %v1642_v39 = vadd.f32 %v1626_v62, %v1609_v36 }
 0x2b2   : > { %v2009_v16 = vpop.f32.mrb[2].mxu1  ;;  %1659 = vst [vmem:[%s2595_s11 + $0x8] sm:$0xff] %v1643_v11 }
 0x2b3   : > { %v1589_v4 = vmul.f32 %v2009_v16, %v3133_v35  ;;  %v1510_v17 = vpop.f32.mrb[3].mxu1  ;;  %1658 = vst [vmem:[%s2595_s11] sm:$0xff] %v1642_v39 }
 0x2b4   : > { %v1588_v29 = vmul.f32 %v3133_v35, %v1510_v17 }
 0x2b5   : > { %v1612_v24 = vadd.f32 %v3138_v38, %v1589_v4  ;;  %v1641_v4 = vld [vmem:[#allocation2 + $0xc9] sm:$0xff] }
 0x2b6   : > { %v1611_v31 = vadd.f32 %v3138_v38, %v1588_v29  ;;  %v1640_v29 = vld [vmem:[#allocation2 + $0xc1] sm:$0xff] }
 0x2b7   : > { %v1645_v40 = vadd.f32 %v1629_v1, %v1612_v24 }
 0x2b8   : > { %v1644_v55 = vadd.f32 %v1628_v25, %v1611_v31 }
 0x2b9   : > { %1661 = vst [vmem:[%s2595_s11 + $0x18] sm:$0xff] %v1645_v40 }
 0x2ba   : > { %1660 = vst [vmem:[%s2595_s11 + $0x10] sm:$0xff] %v1644_v55 }
 0x2bc   : > { %v2012_v59 = vpop.f32.mrb[4].mxu1 }
 0x2bd   : > { %v1591_v37 = vmul.f32 %v2012_v59, %v3133_v35  ;;  %v1520_v12 = vpop.f32.mrb[5].mxu1 }
 0x2be   : > { %v1590_v14 = vmul.f32 %v3133_v35, %v1520_v12 }
 0x2bf   : > { %v1614_v47 = vadd.f32 %v3138_v38, %v1591_v37 }
 0x2c0   : > { %v1613_v44 = vadd.f32 %v3138_v38, %v1590_v14 }
 0x2c1   : > { %v1647_v15 = vadd.f32 %v1631_v61, %v1614_v47 }
 0x2c2   : > { %v1646_v10 = vadd.f32 %v1630_v34, %v1613_v44 }
 0x2c3   : > { %1663 = vst [vmem:[%s2595_s11 + $0x28] sm:$0xff] %v1647_v15 }
 0x2c4   : > { %1662 = vst [vmem:[%s2595_s11 + $0x20] sm:$0xff] %v1646_v10 }
 0x2c8   : > { %v2015_v28 = vpop.f32.mrb[6].mxu1 }
 0x2c9   : > { %v1593_v63 = vmul.f32 %v2015_v28, %v3133_v35  ;;  %v1530_v33 = vpop.f32.mrb[7].mxu1 }
 0x2ca   : > { %v1592_v18 = vmul.f32 %v3133_v35, %v1530_v33 }
 0x2cb   : > { %v1616_v42 = vadd.f32 %v3138_v38, %v1593_v63 }
 0x2cc   : > { %v1615_v46 = vadd.f32 %v3138_v38, %v1592_v18 }
 0x2cd   : > { %v1649_v13 = vadd.f32 %v1633_v41, %v1616_v42 }
 0x2ce   : > { %v1648_v54 = vadd.f32 %v1632_v7, %v1615_v46 }
 0x2cf   : > { %1665 = vst [vmem:[%s2595_s11 + $0x38] sm:$0xff] %v1649_v13 }
 0x2d0   : > { %1664 = vst [vmem:[%s2595_s11 + $0x30] sm:$0xff] %v1648_v54 }
 0x2d2   : > { %v2018_v48 = vpop.f32.mrb[8].mxu1 }
 0x2d3   : > { %v1595_v19 = vmul.f32 %v2018_v48, %v3133_v35  ;;  %v1540_v49 = vpop.f32.mrb[9].mxu1 }
 0x2d4   : > { %v1594_v5 = vmul.f32 %v3133_v35, %v1540_v49 }
 0x2d5   : > { %v1618_v8 = vadd.f32 %v3138_v38, %v1595_v19 }
 0x2d6   : > { %v1617_v50 = vadd.f32 %v3138_v38, %v1594_v5 }
 0x2d7   : > { %v1651_v20 = vadd.f32 %v1635_v57, %v1618_v8 }
 0x2d8   : > { %v1650_v51 = vadd.f32 %v1634_v45, %v1617_v50 }
 0x2d9   : > { %1667 = vst [vmem:[%s2595_s11 + $0x48] sm:$0xff] %v1651_v20 }
 0x2da   : > { %1666 = vst [vmem:[%s2595_s11 + $0x40] sm:$0xff] %v1650_v51 }
 0x2dc   : > { %v2021_v53 = vpop.f32.mrb[10].mxu1 }
 0x2dd   : > { %v1597_v32 = vmul.f32 %v2021_v53, %v3133_v35  ;;  %v1550_v0 = vpop.f32.mrb[11].mxu1 }
 0x2de   : > { %v1596_v60 = vmul.f32 %v3133_v35, %v1550_v0 }
 0x2df   : > { %v1620_v21 = vadd.f32 %v3138_v38, %v1597_v32 }
 0x2e0   : > { %v1619_v3 = vadd.f32 %v3138_v38, %v1596_v60 }
 0x2e1   : > { %v1653_v23 = vadd.f32 %v1637_v2, %v1620_v21 }
 0x2e2   : > { %v1652_v30 = vadd.f32 %v1636_v22, %v1619_v3 }
 0x2e3   : > { %1669 = vst [vmem:[%s2595_s11 + $0x58] sm:$0xff] %v1653_v23 }
 0x2e4   : > { %1668 = vst [vmem:[%s2595_s11 + $0x50] sm:$0xff] %v1652_v30 }
 0x2e7   : > { %v2024_v26 = vpop.f32.mrb[12].mxu1 }
 0x2e8   : > { %v1599_v27 = vmul.f32 %v2024_v26, %v3133_v35  ;;  %v1560_v6 = vpop.f32.mrb[13].mxu1 }
 0x2e9   : > { %v1598_v58 = vmul.f32 %v3133_v35, %v1560_v6 }
 0x2ea   : > { %v1622_v56 = vadd.f32 %v3138_v38, %v1599_v27 }
 0x2eb   : > { %v1621_v9 = vadd.f32 %v3138_v38, %v1598_v58 }
 0x2ec   : > { %v1655_v62 = vadd.f32 %v1639_v52, %v1622_v56 }
 0x2ed   : > { %v1654_v36 = vadd.f32 %v1638_v43, %v1621_v9 }
 0x2ee   : > { %1671 = vst [vmem:[%s2595_s11 + $0x68] sm:$0xff] %v1655_v62 }
 0x2ef   : > { %1670 = vst [vmem:[%s2595_s11 + $0x60] sm:$0xff] %v1654_v36 }
 0x2f1   : > { %v2027_v11 = vpop.f32.mrb[14].mxu1 }
 0x2f2   : > { %v1601_v39 = vmul.f32 %v2027_v11, %v3133_v35  ;;  %v1570_v16 = vpop.f32.mrb[15].mxu1 }
 0x2f3   : > { %v1600_v17 = vmul.f32 %v3133_v35, %v1570_v16 }
 0x2f4   : > { %v1624_v1 = vadd.f32 %v3138_v38, %v1601_v39 }
 0x2f5   : > { %v1623_v24 = vadd.f32 %v3138_v38, %v1600_v17 }
 0x2f6   : > { %v1657_v25 = vadd.f32 %v1641_v4, %v1624_v1 }
 0x2f7   : > { %v1656_v31 = vadd.f32 %v1640_v29, %v1623_v24 }
 0x2f8   : > { %1673 = vst [vmem:[%s2595_s11 + $0x78] sm:$0xff] %v1657_v25 }
 0x2f9   : > { %1672 = vst [vmem:[%s2595_s11 + $0x70] sm:$0xff] %v1656_v31 }
 0x2fa   : > { %2284 = shalt.err (!%p2281_p6)
}
 0x2fb   : > { %s2285_s10 = scalar_lea.hbm %s3192_s25, 2048  ;;  %s2289_s26 = scalar_lea.hbm %s3294_s12, 8192 }
 0x2fc   : > { %p2286_p7 = scmp.ne.s32.totalorder %s3192_s25, %s2285_s10  ;;  %p2290_p13 = scmp.lt.u32.totalorder %s3192_s25, %s3294_s12 }
 0x2fd   : > { %p2291_p3 = scmp.lt.u32.totalorder %s2289_s26, %s2285_s10  ;;  %p2293_p0 = scmp.lt.u32.totalorder %s2285_s10, %s3192_s25 }
 0x2fe   : > { %p2287_p9 = pnand %p2286_p7, %p3295_p2 }
 0x2ff   : > { %p2292_p8 = por %p2291_p3, %p2290_p13 }
 0x300   : > { %p2288_p11 = pneg %p2287_p9 }
 0x301   : > { %p2294_p10 = por %p2293_p0, %p2292_p8 }
 0x303   : > { %p2295_p12 = pnand %p2294_p10, %p2288_p11 }
 0x305   : > { %2298 = shalt.err (!%p2295_p12)
}
 0x306   : > { %s2385_s29 = smov 128   ;;  %s2386_s21 = smov 8  }
 0x307   : > { %2100 = dma.vmem_to_hbm [thread:$0]  (%p3295_p2), %s3194_s23, 2048, %s3192_s25, %s3200_s22, %s2385_s29, %s2385_s29, %s2386_s21  }
 0x308 PF: > { %s3296_s30 = sld [smem:[#allocation23_spill]]  ;;  %s3297_s16 = sld [smem:[#allocation19_spill]] }
 0x309   : > { %s3298_s17 = sld [smem:[#allocation26_spill]] }
 0x30e   : > { %p2117_p1 = scmp.ge.s32.totalorder %s3296_s30, 2  ;;  %s1706_s18 = sand.u32 1, %s3297_s16  }
 0x30f   : > { %p3299_p4 = scmp.ne.s32.totalorder %s3298_s17, 0  ;;  %s1707_s13 = scalar_lea.sflag [#allocation7], %s1706_s18 }
 0x311   : > { %p2110_p5 = pnand %p2117_p1, %p3299_p4 }
 0x313   : > { %2342 = dma.done.wait (!%p2110_p5), %s1707_s13, 2048  }
 0x314   : > { %2344 = vsyncadd (!%p2110_p5), %s1707_s13, 4294965248  ;;  %s25_s20 = sadd.s32 1, %s3296_s30   ;;  %s3300_s15 = sld [smem:[#allocation20_spill]] }
 0x315   : > { %p22_p6 = scmp.ge.s32.totalorder %s25_s20, 6   ;;  %s3301_s10 = sld [smem:[#allocation27_spill]] }
 0x316   : > { %s3302_s16 = sld [smem:[#allocation21_spill]]  ;;  %s3303_s17 = sld [smem:[#allocation22_spill]] }
 0x317   : > { %s3304_s18 = sld [smem:[#allocation24_spill]]  ;;  %s3305_s19 = sld [smem:[#allocation25_spill]] }
 0x318   : > { %s3306_s13 = smov %s2351_s14  ;;  %24 = sbr.rel (!%p22_p6) target bundleno = 9 (0x9), region = 114 }
 0x31a   : > { %s3307_s14 = smov %s3300_s15 }
 0x31b   : > { %s3308_s15 = smov %s3301_s10 }
 0x31f   :  { %1712 = vsyncpa [#allocation6], 1 }
 0x320   :  { %1714 = vsyncpa [#allocation6 + $0x1], 1 }
 0x321   :  { %1715 = vsyncpa [#allocation9], 1 }
 0x322   :  { %1716 = vsyncpa [#allocation7], 1 }
 0x323   :  { %1718 = vsyncpa [#allocation7 + $0x1], 1 }
 0x324   :  { %1719 = vsyncmov [#allocation4] }
 0x327   :  { %s1720_s27 = vpop.sfrf %1719 }
 0x328   :  { %p1814_p2 = scmp.ne.s32.totalorder %s1720_s27, 0 }
 0x32a   :  { %1724 = shalt.err (%p1814_p2)  }

</bundles_post_ra>
